<compile_context>
chip_gen: v7x
topology: tpu7x:2x2x1
jax: 0.10.0
libtpu: 0.0.40
codegen_flags: <defaults>
</compile_context>

<pallas_src>
import jax
import jax.numpy as jnp
from jax import lax
from jax.experimental import pallas as pl
from jax.experimental.pallas import tpu as pltpu


def _local_grouper_kernel(xyz_t_ref, feat_ref, samp_ref, grouped_ref, dist_ref):
    # xyz_t_ref  : (Bt, C, N)      transposed xyz -> lane-dense (Bt, N) coord rows
    # feat_ref   : (Bt, N, C+D)    fused gather table [xyz | points]
    # samp_ref   : (Bt, S, C+D)    FPS-sampled slab  (new_xyz | new_points)
    # grouped_ref: (Bt, K, S, C+D) kNN-grouped slab, neighbour-major rows
    # dist_ref   : (Bt*S, N)       scratch: exact centroid->point sq. distances
    #                              (cloud-major rows: row b*S + s)
    Bt, C, N = xyz_t_ref.shape
    S = samp_ref.shape[1]
    K = grouped_ref.shape[1]

    # Hoisted: per-coordinate lane-dense planes (Bt, N).
    xt = xyz_t_ref[...].astype(jnp.float32)                    # (Bt, C, N)
    xs = [xt[:, c, :] for c in range(C)]                       # C x (Bt, N)
    lane_iota = lax.broadcasted_iota(jnp.int32, (Bt, N), 1)

    # ---- batched furthest point sampling (pointnet2 semantics, start idx 0) --
    # All reductions operate on Bt rows at once; the centroid coordinates are
    # extracted with a masked lane-reduce (exact: one value + zeros), which is
    # amortized over the Bt clouds handled per iteration.
    def fps_body(i, carry):
        temp, farthest = carry                                 # (Bt,N), (Bt,1)
        onehot = lane_iota == farthest                         # (Bt, N)
        d = None
        for c in range(C):
            cent = jnp.sum(jnp.where(onehot, xs[c], 0.0),
                           axis=-1, keepdims=True)             # (Bt, 1) exact
            diff = xs[c] - cent
            sq = diff * diff
            d = sq if d is None else d + sq                    # (Bt, N)
        # Store the Bt exact distance rows for reuse by kNN (row b*S + i).
        for b in range(Bt):
            dist_ref[pl.ds(b * S + i, 1), :] = d[b:b + 1, :]
        temp = jnp.minimum(temp, d)
        maxv = jnp.max(temp, axis=-1, keepdims=True)           # (Bt, 1)
        far_new = jnp.min(jnp.where(temp >= maxv, lane_iota, N),
                          axis=-1, keepdims=True).astype(jnp.int32)
        return temp, far_new

    temp0 = jnp.full((Bt, N), 1e10, dtype=jnp.float32)
    far0 = jnp.zeros((Bt, 1), dtype=jnp.int32)
    lax.fori_loop(0, S, fps_body, (temp0, far0))

    # ---- kNN selection + fused one-hot gather (static, fully unrolled) ------
    # dmat is loaded from the scratch exactly once and carried as a value.
    # Round k=0 selects the centroid itself (distance 0, lowest-index
    # tie-break == the FPS index), so it also produces new_xyz/new_points.
    R = Bt * S
    row_iota = lax.broadcasted_iota(jnp.int32, (R, N), 1)
    dmat = dist_ref[...]                                       # (R, N)
    for k in range(K):
        minv = jnp.min(dmat, axis=-1, keepdims=True)           # (R, 1)
        idx = jnp.min(jnp.where(dmat <= minv, row_iota, N),
                      axis=-1, keepdims=True)                  # (R, 1)
        oh = row_iota == idx                                   # (R, N)
        ohf = oh.astype(jnp.float32)
        for b in range(Bt):
            # One fused (S, N) x (N, C+D) gather per (cloud, k): xyz and
            # features come out of the same MXU pass; f32 accumulation keeps
            # the gather (value * 1.0 + zeros) effectively exact.
            g = jnp.dot(ohf[b * S:(b + 1) * S, :], feat_ref[b],
                        preferred_element_type=jnp.float32)    # (S, C+D)
            grouped_ref[b, k, :, :] = g.astype(grouped_ref.dtype)
            if k == 0:
                samp_ref[b, :, :] = g.astype(samp_ref.dtype)
        if k + 1 < K:
            dmat = jnp.where(oh, jnp.inf, dmat)


def _pick_block_b(batch):
    """Clouds per grid step.  Keep it a divisor of B and BlockSpec-friendly."""
    if batch % 8 == 0:
        return 8
    if batch <= 8:
        return batch
    for bt in (4, 2, 1):
        if batch % bt == 0:
            return bt
    return 1


def local_grouper(xyz, points, groups, kneighbors, *,
                  block_b=None, use_core_parallel=False):
    """xyz: [B, N, 3], points: [B, N, D] ->
       (new_xyz [B,S,3], new_points [B,S,D],
        grouped_xyz [B,S,K,3], grouped_points [B,S,K,D])

    use_core_parallel=True shards the batch grid axis across TensorCores
    (worthwhile on v7x's 2 TCs; leave False on single-TC v5e/v6e).
    """
    B, N, C = xyz.shape
    D = points.shape[-1]
    S, K = int(groups), int(kneighbors)
    CD = C + D

    Bt = _pick_block_b(B) if block_b is None else int(block_b)
    assert B % Bt == 0, "block_b must divide the batch size"

    # Tiny wrapper-side layout plumbing (not compute):
    #   lane-dense coordinate rows for the FPS loop, and the fused gather RHS.
    xyz_t = jnp.transpose(xyz, (0, 2, 1))                      # (B, C, N)
    feat = jnp.concatenate([xyz, points], axis=-1)             # (B, N, C+D)

    dims = (pltpu.CORE_PARALLEL,) if use_core_parallel else ("parallel",)

    samp, grouped = pl.pallas_call(
        _local_grouper_kernel,
        out_shape=(
            jax.ShapeDtypeStruct((B, S, CD), feat.dtype),
            jax.ShapeDtypeStruct((B, K, S, CD), feat.dtype),
        ),
        grid=(B // Bt,),
        in_specs=[
            pl.BlockSpec((Bt, C, N), lambda g: (g, 0, 0)),
            pl.BlockSpec((Bt, N, CD), lambda g: (g, 0, 0)),
        ],
        out_specs=(
            pl.BlockSpec((Bt, S, CD), lambda g: (g, 0, 0)),
            pl.BlockSpec((Bt, K, S, CD), lambda g: (g, 0, 0, 0)),
        ),
        scratch_shapes=[
            pltpu.VMEM((Bt * S, N), jnp.float32),   # reused FPS/kNN distances
        ],
        compiler_params=pltpu.CompilerParams(
            dimension_semantics=dims,
            vmem_limit_bytes=64 * 1024 * 1024),
    )(xyz_t, feat)

    # Cheap XLA splits/transpose back to the module's output convention.
    new_xyz = samp[..., :C]
    new_points = samp[..., C:]
    grouped_t = jnp.transpose(grouped, (0, 2, 1, 3))           # (B, S, K, C+D)
    grouped_xyz = grouped_t[..., :C]
    grouped_points = grouped_t[..., C:]
    return new_xyz, new_points, grouped_xyz, grouped_points


# ---------------- pure-JAX reference (same algorithm) ----------------
def _ref_local_grouper(xyz, points, S, K):
    B, N, _ = xyz.shape
    arange_n = jnp.arange(N, dtype=jnp.int32)

    def fps(x):
        def body(i, carry):
            temp, farthest, idxs = carry
            idxs = idxs.at[i].set(farthest)
            centroid = x[farthest]
            d = jnp.sum((x - centroid) ** 2, axis=-1)
            temp = jnp.minimum(temp, d)
            maxv = jnp.max(temp)
            far = jnp.min(jnp.where(temp >= maxv, arange_n, N)).astype(jnp.int32)
            return temp, far, idxs
        temp0 = jnp.full((N,), 1e10, jnp.float32)
        _, _, idxs = lax.fori_loop(
            0, S, body, (temp0, jnp.int32(0), jnp.zeros((S,), jnp.int32)))
        return idxs

    fps_idx = jax.vmap(fps)(xyz)                       # (B, S)
    gather = jax.vmap(lambda a, i: a[i])
    new_xyz = gather(xyz, fps_idx)
    new_pts = gather(points, fps_idx)

    # direct (q - x)^2 distances (matches the kernel's reused FPS distances)
    diff = new_xyz[:, :, None, :] - xyz[:, None, :, :]  # (B, S, N, 3)
    dist = jnp.sum(diff * diff, axis=-1)                # (B, S, N)

    idx_cols = []
    for _ in range(K):
        minv = jnp.min(dist, axis=-1, keepdims=True)
        idx_k = jnp.min(jnp.where(dist <= minv, arange_n, N), axis=-1)
        idx_cols.append(idx_k)
        dist = jnp.where(arange_n[None, None, :] == idx_k[..., None],
                         jnp.inf, dist)
    knn_idx = jnp.stack(idx_cols, axis=-1)              # (B, S, K)

    grouped_xyz = gather(xyz, knn_idx)
    grouped_points = gather(points, knn_idx)
    return new_xyz, new_pts, grouped_xyz, grouped_points


if __name__ == "__main__":
    key = jax.random.PRNGKey(0)
    B, N, D = 2, 128, 32          # batch, points, feature dim
    S, K = 16, 8                  # groups, kneighbors (LocalGrouper(16, 8))
    k1, k2 = jax.random.split(key)
    xyz = jax.random.normal(k1, (B, N, 3), dtype=jnp.float32)
    points = jax.random.normal(k2, (B, N, D), dtype=jnp.float32)

    out = jax.block_until_ready(local_grouper(xyz, points, S, K))
    new_xyz, new_pts, grouped_xyz, grouped_points = out

    assert new_xyz.shape == (B, S, 3)
    assert new_pts.shape == (B, S, D)
    assert grouped_xyz.shape == (B, S, K, 3)
    assert grouped_points.shape == (B, S, K, D)

    ref = _ref_local_grouper(xyz, points, S, K)
    names = ("new_xyz", "new_points", "grouped_xyz", "grouped_points")
    for name, got, want in zip(names, out, ref):
        assert jnp.all(jnp.isfinite(got)), name
        assert jnp.allclose(got, want, atol=1e-3, rtol=1e-3), name

    print("KERNEL_OK")
</pallas_src>

<mosaic_0001>
module attributes {stable_mosaic.version = 11 : i64} {
  func.func @_local_grouper_kernel(%arg0: i32, %arg1: memref<2x3x128xf32, #tpu.memory_space<vmem>>, %arg2: memref<2x128x35xf32, #tpu.memory_space<vmem>>, %arg3: memref<2x16x35xf32, #tpu.memory_space<vmem>>, %arg4: memref<2x8x16x35xf32, #tpu.memory_space<vmem>>, %arg5: memref<32x128xf32, #tpu.memory_space<vmem>>) attributes {dimension_semantics = [#tpu.dimension_semantics<parallel>], iteration_bounds = array<i64: 1>, scalar_prefetch = 0 : i64, scratch_operands = 1 : i64, tpu.core_type = #tpu.core_type<tc>, window_params = [{transform_indices = @transform_0, window_bounds = array<i64: 2, 3, 128>}, {transform_indices = @transform_1, window_bounds = array<i64: 2, 128, 35>}, {transform_indices = @transform_2, window_bounds = array<i64: 2, 16, 35>}, {transform_indices = @transform_3, window_bounds = array<i64: 2, 8, 16, 35>}]} {
    %c0 = arith.constant 0 : index
    %c0_0 = arith.constant 0 : index
    %c0_1 = arith.constant 0 : index
    %0 = vector.load %arg1[%c0, %c0_0, %c0_1] : memref<2x3x128xf32, #tpu.memory_space<vmem>>, vector<2x3x128xf32>
    %1 = vector.extract_strided_slice %0 {offsets = [0, 0, 0], sizes = [2, 1, 128], strides = [1, 1, 1]} : vector<2x3x128xf32> to vector<2x1x128xf32>
    %2 = vector.shape_cast %1 : vector<2x1x128xf32> to vector<2x128xf32>
    %3 = vector.extract_strided_slice %0 {offsets = [0, 1, 0], sizes = [2, 1, 128], strides = [1, 1, 1]} : vector<2x3x128xf32> to vector<2x1x128xf32>
    %4 = vector.shape_cast %3 : vector<2x1x128xf32> to vector<2x128xf32>
    %5 = vector.extract_strided_slice %0 {offsets = [0, 2, 0], sizes = [2, 1, 128], strides = [1, 1, 1]} : vector<2x3x128xf32> to vector<2x1x128xf32>
    %6 = vector.shape_cast %5 : vector<2x1x128xf32> to vector<2x128xf32>
    %7 = tpu.iota {dimensions = array<i32: 1>} : vector<2x128xi32>
    %cst = arith.constant 1.000000e+10 : f32
    %8 = vector.broadcast %cst : f32 to vector<2x128xf32>
    %c0_i32 = arith.constant 0 : i32
    %9 = vector.broadcast %c0_i32 : i32 to vector<2x1xi32>
    %c0_i32_2 = arith.constant 0 : i32
    %c16_i32 = arith.constant 16 : i32
    %10 = arith.addi %c0_i32_2, %c16_i32 : i32
    %c1_i32 = arith.constant 1 : i32
    %11:2 = scf.for %arg6 = %c0_i32_2 to %10 step %c1_i32 iter_args(%arg7 = %8, %arg8 = %9) -> (vector<2x128xf32>, vector<2x1xi32>)  : i32 {
      %242 = vector.broadcast %arg8 : vector<2x1xi32> to vector<2x128xi32>
      %243 = arith.cmpi eq, %7, %242 : vector<2x128xi32>
      %cst_163 = arith.constant 0.000000e+00 : f32
      %244 = vector.broadcast %cst_163 : f32 to vector<2x128xf32>
      %245 = arith.select %243, %2, %244 : vector<2x128xi1>, vector<2x128xf32>
      %cst_164 = arith.constant dense<0.000000e+00> : vector<2xf32>
      %246 = vector.multi_reduction <add>, %245, %cst_164 [1] : vector<2x128xf32> to vector<2xf32>
      %247 = vector.shape_cast %246 : vector<2xf32> to vector<2x1xf32>
      %248 = vector.broadcast %247 : vector<2x1xf32> to vector<2x128xf32>
      %249 = arith.subf %2, %248 : vector<2x128xf32>
      %250 = arith.mulf %249, %249 : vector<2x128xf32>
      %cst_165 = arith.constant 0.000000e+00 : f32
      %251 = vector.broadcast %cst_165 : f32 to vector<2x128xf32>
      %252 = arith.select %243, %4, %251 : vector<2x128xi1>, vector<2x128xf32>
      %cst_166 = arith.constant dense<0.000000e+00> : vector<2xf32>
      %253 = vector.multi_reduction <add>, %252, %cst_166 [1] : vector<2x128xf32> to vector<2xf32>
      %254 = vector.shape_cast %253 : vector<2xf32> to vector<2x1xf32>
      %255 = vector.broadcast %254 : vector<2x1xf32> to vector<2x128xf32>
      %256 = arith.subf %4, %255 : vector<2x128xf32>
      %257 = arith.mulf %256, %256 : vector<2x128xf32>
      %258 = arith.addf %250, %257 : vector<2x128xf32>
      %cst_167 = arith.constant 0.000000e+00 : f32
      %259 = vector.broadcast %cst_167 : f32 to vector<2x128xf32>
      %260 = arith.select %243, %6, %259 : vector<2x128xi1>, vector<2x128xf32>
      %cst_168 = arith.constant dense<0.000000e+00> : vector<2xf32>
      %261 = vector.multi_reduction <add>, %260, %cst_168 [1] : vector<2x128xf32> to vector<2xf32>
      %262 = vector.shape_cast %261 : vector<2xf32> to vector<2x1xf32>
      %263 = vector.broadcast %262 : vector<2x1xf32> to vector<2x128xf32>
      %264 = arith.subf %6, %263 : vector<2x128xf32>
      %265 = arith.mulf %264, %264 : vector<2x128xf32>
      %266 = arith.addf %258, %265 : vector<2x128xf32>
      %267 = vector.extract_strided_slice %266 {offsets = [0, 0], sizes = [1, 128], strides = [1, 1]} : vector<2x128xf32> to vector<1x128xf32>
      %c0_i32_169 = arith.constant 0 : i32
      %268 = arith.addi %c0_i32_169, %arg6 : i32
      %269 = arith.index_cast %268 : i32 to index
      %c0_170 = arith.constant 0 : index
      %270 = vector.load %arg5[%269, %c0_170] : memref<32x128xf32, #tpu.memory_space<vmem>>, vector<1x128xf32>
      tpu.vector_store %arg5[%269, %c0_170], %267 {strides = array<i32>} : memref<32x128xf32, #tpu.memory_space<vmem>>, vector<1x128xf32>,
      %271 = vector.extract_strided_slice %266 {offsets = [1, 0], sizes = [1, 128], strides = [1, 1]} : vector<2x128xf32> to vector<1x128xf32>
      %c16_i32_171 = arith.constant 16 : i32
      %272 = arith.addi %c16_i32_171, %arg6 : i32
      %273 = arith.index_cast %272 : i32 to index
      %c0_172 = arith.constant 0 : index
      %274 = vector.load %arg5[%273, %c0_172] : memref<32x128xf32, #tpu.memory_space<vmem>>, vector<1x128xf32>
      tpu.vector_store %arg5[%273, %c0_172], %271 {strides = array<i32>} : memref<32x128xf32, #tpu.memory_space<vmem>>, vector<1x128xf32>,
      %275 = arith.minimumf %arg7, %266 : vector<2x128xf32>
      %cst_173 = arith.constant dense<0xFF800000> : vector<2xf32>
      %276 = vector.multi_reduction <maximumf>, %275, %cst_173 [1] : vector<2x128xf32> to vector<2xf32>
      %277 = vector.shape_cast %276 : vector<2xf32> to vector<2x1xf32>
      %278 = vector.broadcast %277 : vector<2x1xf32> to vector<2x128xf32>
      %279 = arith.cmpf oge, %275, %278 : vector<2x128xf32>
      %c128_i32_174 = arith.constant 128 : i32
      %280 = vector.broadcast %c128_i32_174 : i32 to vector<2x128xi32>
      %281 = arith.select %279, %7, %280 : vector<2x128xi1>, vector<2x128xi32>
      %cst_175 = arith.constant dense<2147483647> : vector<2xi32>
      %282 = vector.multi_reduction <minsi>, %281, %cst_175 [1] : vector<2x128xi32> to vector<2xi32>
      %283 = vector.shape_cast %282 : vector<2xi32> to vector<2x1xi32>
      scf.yield %275, %283 : vector<2x128xf32>, vector<2x1xi32>
    }
    %c16_i32_3 = arith.constant 16 : i32
    %12 = tpu.iota {dimensions = array<i32: 1>} : vector<32x128xi32>
    %c0_4 = arith.constant 0 : index
    %c0_5 = arith.constant 0 : index
    %13 = vector.load %arg5[%c0_4, %c0_5] : memref<32x128xf32, #tpu.memory_space<vmem>>, vector<32x128xf32>
    %cst_6 = arith.constant dense<0x7F800000> : vector<32xf32>
    %14 = vector.multi_reduction <minimumf>, %13, %cst_6 [1] : vector<32x128xf32> to vector<32xf32>
    %15 = vector.shape_cast %14 : vector<32xf32> to vector<32x1xf32>
    %16 = vector.broadcast %15 : vector<32x1xf32> to vector<32x128xf32>
    %17 = arith.cmpf ole, %13, %16 : vector<32x128xf32>
    %c128_i32 = arith.constant 128 : i32
    %18 = vector.broadcast %c128_i32 : i32 to vector<32x128xi32>
    %19 = arith.select %17, %12, %18 : vector<32x128xi1>, vector<32x128xi32>
    %cst_7 = arith.constant dense<2147483647> : vector<32xi32>
    %20 = vector.multi_reduction <minsi>, %19, %cst_7 [1] : vector<32x128xi32> to vector<32xi32>
    %21 = vector.shape_cast %20 : vector<32xi32> to vector<32x1xi32>
    %22 = vector.broadcast %21 : vector<32x1xi32> to vector<32x128xi32>
    %23 = arith.cmpi eq, %12, %22 : vector<32x128xi32>
    %24 = arith.extui %23 : vector<32x128xi1> to vector<32x128xi32>
    %25 = arith.sitofp %24 : vector<32x128xi32> to vector<32x128xf32>
    %26 = vector.extract_strided_slice %25 {offsets = [0, 0], sizes = [16, 128], strides = [1, 1]} : vector<32x128xf32> to vector<16x128xf32>
    %c0_8 = arith.constant 0 : index
    %c0_9 = arith.constant 0 : index
    %c0_10 = arith.constant 0 : index
    %27 = vector.load %arg2[%c0_8, %c0_9, %c0_10] : memref<2x128x35xf32, #tpu.memory_space<vmem>>, vector<1x128x35xf32>
    %28 = vector.shape_cast %27 : vector<1x128x35xf32> to vector<128x35xf32>
    %cst_11 = arith.constant dense<0.000000e+00> : vector<16x35xf32>
    %29 = tpu.matmul %26, %28, %cst_11 {dimension_numbers = #tpu.dot_dimension_numbers<[1], [0], [0], [1], [0, 0, 1, 1], [], []>} : vector<16x128xf32>, vector<128x35xf32>, vector<16x35xf32> -> vector<16x35xf32>
    %c0_12 = arith.constant 0 : index
    %c0_13 = arith.constant 0 : index
    %c0_14 = arith.constant 0 : index
    %c0_15 = arith.constant 0 : index
    %30 = vector.load %arg4[%c0_12, %c0_13, %c0_14, %c0_15] : memref<2x8x16x35xf32, #tpu.memory_space<vmem>>, vector<1x1x16x35xf32>
    %31 = vector.shape_cast %30 : vector<1x1x16x35xf32> to vector<16x35xf32>
    %32 = vector.shape_cast %29 : vector<16x35xf32> to vector<1x1x16x35xf32>
    tpu.vector_store %arg4[%c0_12, %c0_13, %c0_14, %c0_15], %32 {strides = array<i32>} : memref<2x8x16x35xf32, #tpu.memory_space<vmem>>, vector<1x1x16x35xf32>,
    %c0_16 = arith.constant 0 : index
    %c0_17 = arith.constant 0 : index
    %c0_18 = arith.constant 0 : index
    %33 = vector.load %arg3[%c0_16, %c0_17, %c0_18] : memref<2x16x35xf32, #tpu.memory_space<vmem>>, vector<1x16x35xf32>
    %34 = vector.shape_cast %33 : vector<1x16x35xf32> to vector<16x35xf32>
    %35 = vector.shape_cast %29 : vector<16x35xf32> to vector<1x16x35xf32>
    tpu.vector_store %arg3[%c0_16, %c0_17, %c0_18], %35 {strides = array<i32>} : memref<2x16x35xf32, #tpu.memory_space<vmem>>, vector<1x16x35xf32>,
    %36 = vector.extract_strided_slice %25 {offsets = [16, 0], sizes = [16, 128], strides = [1, 1]} : vector<32x128xf32> to vector<16x128xf32>
    %c1 = arith.constant 1 : index
    %c0_19 = arith.constant 0 : index
    %c0_20 = arith.constant 0 : index
    %37 = vector.load %arg2[%c1, %c0_19, %c0_20] : memref<2x128x35xf32, #tpu.memory_space<vmem>>, vector<1x128x35xf32>
    %38 = vector.shape_cast %37 : vector<1x128x35xf32> to vector<128x35xf32>
    %cst_21 = arith.constant dense<0.000000e+00> : vector<16x35xf32>
    %39 = tpu.matmul %36, %38, %cst_21 {dimension_numbers = #tpu.dot_dimension_numbers<[1], [0], [0], [1], [0, 0, 1, 1], [], []>} : vector<16x128xf32>, vector<128x35xf32>, vector<16x35xf32> -> vector<16x35xf32>
    %c1_22 = arith.constant 1 : index
    %c0_23 = arith.constant 0 : index
    %c0_24 = arith.constant 0 : index
    %c0_25 = arith.constant 0 : index
    %40 = vector.load %arg4[%c1_22, %c0_23, %c0_24, %c0_25] : memref<2x8x16x35xf32, #tpu.memory_space<vmem>>, vector<1x1x16x35xf32>
    %41 = vector.shape_cast %40 : vector<1x1x16x35xf32> to vector<16x35xf32>
    %42 = vector.shape_cast %39 : vector<16x35xf32> to vector<1x1x16x35xf32>
    tpu.vector_store %arg4[%c1_22, %c0_23, %c0_24, %c0_25], %42 {strides = array<i32>} : memref<2x8x16x35xf32, #tpu.memory_space<vmem>>, vector<1x1x16x35xf32>,
    %c1_26 = arith.constant 1 : index
    %c0_27 = arith.constant 0 : index
    %c0_28 = arith.constant 0 : index
    %43 = vector.load %arg3[%c1_26, %c0_27, %c0_28] : memref<2x16x35xf32, #tpu.memory_space<vmem>>, vector<1x16x35xf32>
    %44 = vector.shape_cast %43 : vector<1x16x35xf32> to vector<16x35xf32>
    %45 = vector.shape_cast %39 : vector<16x35xf32> to vector<1x16x35xf32>
    tpu.vector_store %arg3[%c1_26, %c0_27, %c0_28], %45 {strides = array<i32>} : memref<2x16x35xf32, #tpu.memory_space<vmem>>, vector<1x16x35xf32>,
    %cst_29 = arith.constant 0x7F800000 : f32
    %46 = vector.broadcast %cst_29 : f32 to vector<32x128xf32>
    %47 = arith.select %23, %46, %13 : vector<32x128xi1>, vector<32x128xf32>
    %cst_30 = arith.constant dense<0x7F800000> : vector<32xf32>
    %48 = vector.multi_reduction <minimumf>, %47, %cst_30 [1] : vector<32x128xf32> to vector<32xf32>
    %49 = vector.shape_cast %48 : vector<32xf32> to vector<32x1xf32>
    %50 = vector.broadcast %49 : vector<32x1xf32> to vector<32x128xf32>
    %51 = arith.cmpf ole, %47, %50 : vector<32x128xf32>
    %c128_i32_31 = arith.constant 128 : i32
    %52 = vector.broadcast %c128_i32_31 : i32 to vector<32x128xi32>
    %53 = arith.select %51, %12, %52 : vector<32x128xi1>, vector<32x128xi32>
    %cst_32 = arith.constant dense<2147483647> : vector<32xi32>
    %54 = vector.multi_reduction <minsi>, %53, %cst_32 [1] : vector<32x128xi32> to vector<32xi32>
    %55 = vector.shape_cast %54 : vector<32xi32> to vector<32x1xi32>
    %56 = vector.broadcast %55 : vector<32x1xi32> to vector<32x128xi32>
    %57 = arith.cmpi eq, %12, %56 : vector<32x128xi32>
    %58 = arith.extui %57 : vector<32x128xi1> to vector<32x128xi32>
    %59 = arith.sitofp %58 : vector<32x128xi32> to vector<32x128xf32>
    %60 = vector.extract_strided_slice %59 {offsets = [0, 0], sizes = [16, 128], strides = [1, 1]} : vector<32x128xf32> to vector<16x128xf32>
    %c0_33 = arith.constant 0 : index
    %c0_34 = arith.constant 0 : index
    %c0_35 = arith.constant 0 : index
    %61 = vector.load %arg2[%c0_33, %c0_34, %c0_35] : memref<2x128x35xf32, #tpu.memory_space<vmem>>, vector<1x128x35xf32>
    %62 = vector.shape_cast %61 : vector<1x128x35xf32> to vector<128x35xf32>
    %cst_36 = arith.constant dense<0.000000e+00> : vector<16x35xf32>
    %63 = tpu.matmul %60, %62, %cst_36 {dimension_numbers = #tpu.dot_dimension_numbers<[1], [0], [0], [1], [0, 0, 1, 1], [], []>} : vector<16x128xf32>, vector<128x35xf32>, vector<16x35xf32> -> vector<16x35xf32>
    %c0_37 = arith.constant 0 : index
    %c1_38 = arith.constant 1 : index
    %c0_39 = arith.constant 0 : index
    %c0_40 = arith.constant 0 : index
    %64 = vector.load %arg4[%c0_37, %c1_38, %c0_39, %c0_40] : memref<2x8x16x35xf32, #tpu.memory_space<vmem>>, vector<1x1x16x35xf32>
    %65 = vector.shape_cast %64 : vector<1x1x16x35xf32> to vector<16x35xf32>
    %66 = vector.shape_cast %63 : vector<16x35xf32> to vector<1x1x16x35xf32>
    tpu.vector_store %arg4[%c0_37, %c1_38, %c0_39, %c0_40], %66 {strides = array<i32>} : memref<2x8x16x35xf32, #tpu.memory_space<vmem>>, vector<1x1x16x35xf32>,
    %67 = vector.extract_strided_slice %59 {offsets = [16, 0], sizes = [16, 128], strides = [1, 1]} : vector<32x128xf32> to vector<16x128xf32>
    %c1_41 = arith.constant 1 : index
    %c0_42 = arith.constant 0 : index
    %c0_43 = arith.constant 0 : index
    %68 = vector.load %arg2[%c1_41, %c0_42, %c0_43] : memref<2x128x35xf32, #tpu.memory_space<vmem>>, vector<1x128x35xf32>
    %69 = vector.shape_cast %68 : vector<1x128x35xf32> to vector<128x35xf32>
    %cst_44 = arith.constant dense<0.000000e+00> : vector<16x35xf32>
    %70 = tpu.matmul %67, %69, %cst_44 {dimension_numbers = #tpu.dot_dimension_numbers<[1], [0], [0], [1], [0, 0, 1, 1], [], []>} : vector<16x128xf32>, vector<128x35xf32>, vector<16x35xf32> -> vector<16x35xf32>
    %c1_45 = arith.constant 1 : index
    %c1_46 = arith.constant 1 : index
    %c0_47 = arith.constant 0 : index
    %c0_48 = arith.constant 0 : index
    %71 = vector.load %arg4[%c1_45, %c1_46, %c0_47, %c0_48] : memref<2x8x16x35xf32, #tpu.memory_space<vmem>>, vector<1x1x16x35xf32>
    %72 = vector.shape_cast %71 : vector<1x1x16x35xf32> to vector<16x35xf32>
    %73 = vector.shape_cast %70 : vector<16x35xf32> to vector<1x1x16x35xf32>
    tpu.vector_store %arg4[%c1_45, %c1_46, %c0_47, %c0_48], %73 {strides = array<i32>} : memref<2x8x16x35xf32, #tpu.memory_space<vmem>>, vector<1x1x16x35xf32>,
    %cst_49 = arith.constant 0x7F800000 : f32
    %74 = vector.broadcast %cst_49 : f32 to vector<32x128xf32>
    %75 = arith.select %57, %74, %47 : vector<32x128xi1>, vector<32x128xf32>
    %cst_50 = arith.constant dense<0x7F800000> : vector<32xf32>
    %76 = vector.multi_reduction <minimumf>, %75, %cst_50 [1] : vector<32x128xf32> to vector<32xf32>
    %77 = vector.shape_cast %76 : vector<32xf32> to vector<32x1xf32>
    %78 = vector.broadcast %77 : vector<32x1xf32> to vector<32x128xf32>
    %79 = arith.cmpf ole, %75, %78 : vector<32x128xf32>
    %c128_i32_51 = arith.constant 128 : i32
    %80 = vector.broadcast %c128_i32_51 : i32 to vector<32x128xi32>
    %81 = arith.select %79, %12, %80 : vector<32x128xi1>, vector<32x128xi32>
    %cst_52 = arith.constant dense<2147483647> : vector<32xi32>
    %82 = vector.multi_reduction <minsi>, %81, %cst_52 [1] : vector<32x128xi32> to vector<32xi32>
    %83 = vector.shape_cast %82 : vector<32xi32> to vector<32x1xi32>
    %84 = vector.broadcast %83 : vector<32x1xi32> to vector<32x128xi32>
    %85 = arith.cmpi eq, %12, %84 : vector<32x128xi32>
    %86 = arith.extui %85 : vector<32x128xi1> to vector<32x128xi32>
    %87 = arith.sitofp %86 : vector<32x128xi32> to vector<32x128xf32>
    %88 = vector.extract_strided_slice %87 {offsets = [0, 0], sizes = [16, 128], strides = [1, 1]} : vector<32x128xf32> to vector<16x128xf32>
    %c0_53 = arith.constant 0 : index
    %c0_54 = arith.constant 0 : index
    %c0_55 = arith.constant 0 : index
    %89 = vector.load %arg2[%c0_53, %c0_54, %c0_55] : memref<2x128x35xf32, #tpu.memory_space<vmem>>, vector<1x128x35xf32>
    %90 = vector.shape_cast %89 : vector<1x128x35xf32> to vector<128x35xf32>
    %cst_56 = arith.constant dense<0.000000e+00> : vector<16x35xf32>
    %91 = tpu.matmul %88, %90, %cst_56 {dimension_numbers = #tpu.dot_dimension_numbers<[1], [0], [0], [1], [0, 0, 1, 1], [], []>} : vector<16x128xf32>, vector<128x35xf32>, vector<16x35xf32> -> vector<16x35xf32>
    %c0_57 = arith.constant 0 : index
    %c2 = arith.constant 2 : index
    %c0_58 = arith.constant 0 : index
    %c0_59 = arith.constant 0 : index
    %92 = vector.load %arg4[%c0_57, %c2, %c0_58, %c0_59] : memref<2x8x16x35xf32, #tpu.memory_space<vmem>>, vector<1x1x16x35xf32>
    %93 = vector.shape_cast %92 : vector<1x1x16x35xf32> to vector<16x35xf32>
    %94 = vector.shape_cast %91 : vector<16x35xf32> to vector<1x1x16x35xf32>
    tpu.vector_store %arg4[%c0_57, %c2, %c0_58, %c0_59], %94 {strides = array<i32>} : memref<2x8x16x35xf32, #tpu.memory_space<vmem>>, vector<1x1x16x35xf32>,
    %95 = vector.extract_strided_slice %87 {offsets = [16, 0], sizes = [16, 128], strides = [1, 1]} : vector<32x128xf32> to vector<16x128xf32>
    %c1_60 = arith.constant 1 : index
    %c0_61 = arith.constant 0 : index
    %c0_62 = arith.constant 0 : index
    %96 = vector.load %arg2[%c1_60, %c0_61, %c0_62] : memref<2x128x35xf32, #tpu.memory_space<vmem>>, vector<1x128x35xf32>
    %97 = vector.shape_cast %96 : vector<1x128x35xf32> to vector<128x35xf32>
    %cst_63 = arith.constant dense<0.000000e+00> : vector<16x35xf32>
    %98 = tpu.matmul %95, %97, %cst_63 {dimension_numbers = #tpu.dot_dimension_numbers<[1], [0], [0], [1], [0, 0, 1, 1], [], []>} : vector<16x128xf32>, vector<128x35xf32>, vector<16x35xf32> -> vector<16x35xf32>
    %c1_64 = arith.constant 1 : index
    %c2_65 = arith.constant 2 : index
    %c0_66 = arith.constant 0 : index
    %c0_67 = arith.constant 0 : index
    %99 = vector.load %arg4[%c1_64, %c2_65, %c0_66, %c0_67] : memref<2x8x16x35xf32, #tpu.memory_space<vmem>>, vector<1x1x16x35xf32>
    %100 = vector.shape_cast %99 : vector<1x1x16x35xf32> to vector<16x35xf32>
    %101 = vector.shape_cast %98 : vector<16x35xf32> to vector<1x1x16x35xf32>
    tpu.vector_store %arg4[%c1_64, %c2_65, %c0_66, %c0_67], %101 {strides = array<i32>} : memref<2x8x16x35xf32, #tpu.memory_space<vmem>>, vector<1x1x16x35xf32>,
    %cst_68 = arith.constant 0x7F800000 : f32
    %102 = vector.broadcast %cst_68 : f32 to vector<32x128xf32>
    %103 = arith.select %85, %102, %75 : vector<32x128xi1>, vector<32x128xf32>
    %cst_69 = arith.constant dense<0x7F800000> : vector<32xf32>
    %104 = vector.multi_reduction <minimumf>, %103, %cst_69 [1] : vector<32x128xf32> to vector<32xf32>
    %105 = vector.shape_cast %104 : vector<32xf32> to vector<32x1xf32>
    %106 = vector.broadcast %105 : vector<32x1xf32> to vector<32x128xf32>
    %107 = arith.cmpf ole, %103, %106 : vector<32x128xf32>
    %c128_i32_70 = arith.constant 128 : i32
    %108 = vector.broadcast %c128_i32_70 : i32 to vector<32x128xi32>
    %109 = arith.select %107, %12, %108 : vector<32x128xi1>, vector<32x128xi32>
    %cst_71 = arith.constant dense<2147483647> : vector<32xi32>
    %110 = vector.multi_reduction <minsi>, %109, %cst_71 [1] : vector<32x128xi32> to vector<32xi32>
    %111 = vector.shape_cast %110 : vector<32xi32> to vector<32x1xi32>
    %112 = vector.broadcast %111 : vector<32x1xi32> to vector<32x128xi32>
    %113 = arith.cmpi eq, %12, %112 : vector<32x128xi32>
    %114 = arith.extui %113 : vector<32x128xi1> to vector<32x128xi32>
    %115 = arith.sitofp %114 : vector<32x128xi32> to vector<32x128xf32>
    %116 = vector.extract_strided_slice %115 {offsets = [0, 0], sizes = [16, 128], strides = [1, 1]} : vector<32x128xf32> to vector<16x128xf32>
    %c0_72 = arith.constant 0 : index
    %c0_73 = arith.constant 0 : index
    %c0_74 = arith.constant 0 : index
    %117 = vector.load %arg2[%c0_72, %c0_73, %c0_74] : memref<2x128x35xf32, #tpu.memory_space<vmem>>, vector<1x128x35xf32>
    %118 = vector.shape_cast %117 : vector<1x128x35xf32> to vector<128x35xf32>
    %cst_75 = arith.constant dense<0.000000e+00> : vector<16x35xf32>
    %119 = tpu.matmul %116, %118, %cst_75 {dimension_numbers = #tpu.dot_dimension_numbers<[1], [0], [0], [1], [0, 0, 1, 1], [], []>} : vector<16x128xf32>, vector<128x35xf32>, vector<16x35xf32> -> vector<16x35xf32>
    %c0_76 = arith.constant 0 : index
    %c3 = arith.constant 3 : index
    %c0_77 = arith.constant 0 : index
    %c0_78 = arith.constant 0 : index
    %120 = vector.load %arg4[%c0_76, %c3, %c0_77, %c0_78] : memref<2x8x16x35xf32, #tpu.memory_space<vmem>>, vector<1x1x16x35xf32>
    %121 = vector.shape_cast %120 : vector<1x1x16x35xf32> to vector<16x35xf32>
    %122 = vector.shape_cast %119 : vector<16x35xf32> to vector<1x1x16x35xf32>
    tpu.vector_store %arg4[%c0_76, %c3, %c0_77, %c0_78], %122 {strides = array<i32>} : memref<2x8x16x35xf32, #tpu.memory_space<vmem>>, vector<1x1x16x35xf32>,
    %123 = vector.extract_strided_slice %115 {offsets = [16, 0], sizes = [16, 128], strides = [1, 1]} : vector<32x128xf32> to vector<16x128xf32>
    %c1_79 = arith.constant 1 : index
    %c0_80 = arith.constant 0 : index
    %c0_81 = arith.constant 0 : index
    %124 = vector.load %arg2[%c1_79, %c0_80, %c0_81] : memref<2x128x35xf32, #tpu.memory_space<vmem>>, vector<1x128x35xf32>
    %125 = vector.shape_cast %124 : vector<1x128x35xf32> to vector<128x35xf32>
    %cst_82 = arith.constant dense<0.000000e+00> : vector<16x35xf32>
    %126 = tpu.matmul %123, %125, %cst_82 {dimension_numbers = #tpu.dot_dimension_numbers<[1], [0], [0], [1], [0, 0, 1, 1], [], []>} : vector<16x128xf32>, vector<128x35xf32>, vector<16x35xf32> -> vector<16x35xf32>
    %c1_83 = arith.constant 1 : index
    %c3_84 = arith.constant 3 : index
    %c0_85 = arith.constant 0 : index
    %c0_86 = arith.constant 0 : index
    %127 = vector.load %arg4[%c1_83, %c3_84, %c0_85, %c0_86] : memref<2x8x16x35xf32, #tpu.memory_space<vmem>>, vector<1x1x16x35xf32>
    %128 = vector.shape_cast %127 : vector<1x1x16x35xf32> to vector<16x35xf32>
    %129 = vector.shape_cast %126 : vector<16x35xf32> to vector<1x1x16x35xf32>
    tpu.vector_store %arg4[%c1_83, %c3_84, %c0_85, %c0_86], %129 {strides = array<i32>} : memref<2x8x16x35xf32, #tpu.memory_space<vmem>>, vector<1x1x16x35xf32>,
    %cst_87 = arith.constant 0x7F800000 : f32
    %130 = vector.broadcast %cst_87 : f32 to vector<32x128xf32>
    %131 = arith.select %113, %130, %103 : vector<32x128xi1>, vector<32x128xf32>
    %cst_88 = arith.constant dense<0x7F800000> : vector<32xf32>
    %132 = vector.multi_reduction <minimumf>, %131, %cst_88 [1] : vector<32x128xf32> to vector<32xf32>
    %133 = vector.shape_cast %132 : vector<32xf32> to vector<32x1xf32>
    %134 = vector.broadcast %133 : vector<32x1xf32> to vector<32x128xf32>
    %135 = arith.cmpf ole, %131, %134 : vector<32x128xf32>
    %c128_i32_89 = arith.constant 128 : i32
    %136 = vector.broadcast %c128_i32_89 : i32 to vector<32x128xi32>
    %137 = arith.select %135, %12, %136 : vector<32x128xi1>, vector<32x128xi32>
    %cst_90 = arith.constant dense<2147483647> : vector<32xi32>
    %138 = vector.multi_reduction <minsi>, %137, %cst_90 [1] : vector<32x128xi32> to vector<32xi32>
    %139 = vector.shape_cast %138 : vector<32xi32> to vector<32x1xi32>
    %140 = vector.broadcast %139 : vector<32x1xi32> to vector<32x128xi32>
    %141 = arith.cmpi eq, %12, %140 : vector<32x128xi32>
    %142 = arith.extui %141 : vector<32x128xi1> to vector<32x128xi32>
    %143 = arith.sitofp %142 : vector<32x128xi32> to vector<32x128xf32>
    %144 = vector.extract_strided_slice %143 {offsets = [0, 0], sizes = [16, 128], strides = [1, 1]} : vector<32x128xf32> to vector<16x128xf32>
    %c0_91 = arith.constant 0 : index
    %c0_92 = arith.constant 0 : index
    %c0_93 = arith.constant 0 : index
    %145 = vector.load %arg2[%c0_91, %c0_92, %c0_93] : memref<2x128x35xf32, #tpu.memory_space<vmem>>, vector<1x128x35xf32>
    %146 = vector.shape_cast %145 : vector<1x128x35xf32> to vector<128x35xf32>
    %cst_94 = arith.constant dense<0.000000e+00> : vector<16x35xf32>
    %147 = tpu.matmul %144, %146, %cst_94 {dimension_numbers = #tpu.dot_dimension_numbers<[1], [0], [0], [1], [0, 0, 1, 1], [], []>} : vector<16x128xf32>, vector<128x35xf32>, vector<16x35xf32> -> vector<16x35xf32>
    %c0_95 = arith.constant 0 : index
    %c4 = arith.constant 4 : index
    %c0_96 = arith.constant 0 : index
    %c0_97 = arith.constant 0 : index
    %148 = vector.load %arg4[%c0_95, %c4, %c0_96, %c0_97] : memref<2x8x16x35xf32, #tpu.memory_space<vmem>>, vector<1x1x16x35xf32>
    %149 = vector.shape_cast %148 : vector<1x1x16x35xf32> to vector<16x35xf32>
    %150 = vector.shape_cast %147 : vector<16x35xf32> to vector<1x1x16x35xf32>
    tpu.vector_store %arg4[%c0_95, %c4, %c0_96, %c0_97], %150 {strides = array<i32>} : memref<2x8x16x35xf32, #tpu.memory_space<vmem>>, vector<1x1x16x35xf32>,
    %151 = vector.extract_strided_slice %143 {offsets = [16, 0], sizes = [16, 128], strides = [1, 1]} : vector<32x128xf32> to vector<16x128xf32>
    %c1_98 = arith.constant 1 : index
    %c0_99 = arith.constant 0 : index
    %c0_100 = arith.constant 0 : index
    %152 = vector.load %arg2[%c1_98, %c0_99, %c0_100] : memref<2x128x35xf32, #tpu.memory_space<vmem>>, vector<1x128x35xf32>
    %153 = vector.shape_cast %152 : vector<1x128x35xf32> to vector<128x35xf32>
    %cst_101 = arith.constant dense<0.000000e+00> : vector<16x35xf32>
    %154 = tpu.matmul %151, %153, %cst_101 {dimension_numbers = #tpu.dot_dimension_numbers<[1], [0], [0], [1], [0, 0, 1, 1], [], []>} : vector<16x128xf32>, vector<128x35xf32>, vector<16x35xf32> -> vector<16x35xf32>
    %c1_102 = arith.constant 1 : index
    %c4_103 = arith.constant 4 : index
    %c0_104 = arith.constant 0 : index
    %c0_105 = arith.constant 0 : index
    %155 = vector.load %arg4[%c1_102, %c4_103, %c0_104, %c0_105] : memref<2x8x16x35xf32, #tpu.memory_space<vmem>>, vector<1x1x16x35xf32>
    %156 = vector.shape_cast %155 : vector<1x1x16x35xf32> to vector<16x35xf32>
    %157 = vector.shape_cast %154 : vector<16x35xf32> to vector<1x1x16x35xf32>
    tpu.vector_store %arg4[%c1_102, %c4_103, %c0_104, %c0_105], %157 {strides = array<i32>} : memref<2x8x16x35xf32, #tpu.memory_space<vmem>>, vector<1x1x16x35xf32>,
    %cst_106 = arith.constant 0x7F800000 : f32
    %158 = vector.broadcast %cst_106 : f32 to vector<32x128xf32>
    %159 = arith.select %141, %158, %131 : vector<32x128xi1>, vector<32x128xf32>
    %cst_107 = arith.constant dense<0x7F800000> : vector<32xf32>
    %160 = vector.multi_reduction <minimumf>, %159, %cst_107 [1] : vector<32x128xf32> to vector<32xf32>
    %161 = vector.shape_cast %160 : vector<32xf32> to vector<32x1xf32>
    %162 = vector.broadcast %161 : vector<32x1xf32> to vector<32x128xf32>
    %163 = arith.cmpf ole, %159, %162 : vector<32x128xf32>
    %c128_i32_108 = arith.constant 128 : i32
    %164 = vector.broadcast %c128_i32_108 : i32 to vector<32x128xi32>
    %165 = arith.select %163, %12, %164 : vector<32x128xi1>, vector<32x128xi32>
    %cst_109 = arith.constant dense<2147483647> : vector<32xi32>
    %166 = vector.multi_reduction <minsi>, %165, %cst_109 [1] : vector<32x128xi32> to vector<32xi32>
    %167 = vector.shape_cast %166 : vector<32xi32> to vector<32x1xi32>
    %168 = vector.broadcast %167 : vector<32x1xi32> to vector<32x128xi32>
    %169 = arith.cmpi eq, %12, %168 : vector<32x128xi32>
    %170 = arith.extui %169 : vector<32x128xi1> to vector<32x128xi32>
    %171 = arith.sitofp %170 : vector<32x128xi32> to vector<32x128xf32>
    %172 = vector.extract_strided_slice %171 {offsets = [0, 0], sizes = [16, 128], strides = [1, 1]} : vector<32x128xf32> to vector<16x128xf32>
    %c0_110 = arith.constant 0 : index
    %c0_111 = arith.constant 0 : index
    %c0_112 = arith.constant 0 : index
    %173 = vector.load %arg2[%c0_110, %c0_111, %c0_112] : memref<2x128x35xf32, #tpu.memory_space<vmem>>, vector<1x128x35xf32>
    %174 = vector.shape_cast %173 : vector<1x128x35xf32> to vector<128x35xf32>
    %cst_113 = arith.constant dense<0.000000e+00> : vector<16x35xf32>
    %175 = tpu.matmul %172, %174, %cst_113 {dimension_numbers = #tpu.dot_dimension_numbers<[1], [0], [0], [1], [0, 0, 1, 1], [], []>} : vector<16x128xf32>, vector<128x35xf32>, vector<16x35xf32> -> vector<16x35xf32>
    %c0_114 = arith.constant 0 : index
    %c5 = arith.constant 5 : index
    %c0_115 = arith.constant 0 : index
    %c0_116 = arith.constant 0 : index
    %176 = vector.load %arg4[%c0_114, %c5, %c0_115, %c0_116] : memref<2x8x16x35xf32, #tpu.memory_space<vmem>>, vector<1x1x16x35xf32>
    %177 = vector.shape_cast %176 : vector<1x1x16x35xf32> to vector<16x35xf32>
    %178 = vector.shape_cast %175 : vector<16x35xf32> to vector<1x1x16x35xf32>
    tpu.vector_store %arg4[%c0_114, %c5, %c0_115, %c0_116], %178 {strides = array<i32>} : memref<2x8x16x35xf32, #tpu.memory_space<vmem>>, vector<1x1x16x35xf32>,
    %179 = vector.extract_strided_slice %171 {offsets = [16, 0], sizes = [16, 128], strides = [1, 1]} : vector<32x128xf32> to vector<16x128xf32>
    %c1_117 = arith.constant 1 : index
    %c0_118 = arith.constant 0 : index
    %c0_119 = arith.constant 0 : index
    %180 = vector.load %arg2[%c1_117, %c0_118, %c0_119] : memref<2x128x35xf32, #tpu.memory_space<vmem>>, vector<1x128x35xf32>
    %181 = vector.shape_cast %180 : vector<1x128x35xf32> to vector<128x35xf32>
    %cst_120 = arith.constant dense<0.000000e+00> : vector<16x35xf32>
    %182 = tpu.matmul %179, %181, %cst_120 {dimension_numbers = #tpu.dot_dimension_numbers<[1], [0], [0], [1], [0, 0, 1, 1], [], []>} : vector<16x128xf32>, vector<128x35xf32>, vector<16x35xf32> -> vector<16x35xf32>
    %c1_121 = arith.constant 1 : index
    %c5_122 = arith.constant 5 : index
    %c0_123 = arith.constant 0 : index
    %c0_124 = arith.constant 0 : index
    %183 = vector.load %arg4[%c1_121, %c5_122, %c0_123, %c0_124] : memref<2x8x16x35xf32, #tpu.memory_space<vmem>>, vector<1x1x16x35xf32>
    %184 = vector.shape_cast %183 : vector<1x1x16x35xf32> to vector<16x35xf32>
    %185 = vector.shape_cast %182 : vector<16x35xf32> to vector<1x1x16x35xf32>
    tpu.vector_store %arg4[%c1_121, %c5_122, %c0_123, %c0_124], %185 {strides = array<i32>} : memref<2x8x16x35xf32, #tpu.memory_space<vmem>>, vector<1x1x16x35xf32>,
    %cst_125 = arith.constant 0x7F800000 : f32
    %186 = vector.broadcast %cst_125 : f32 to vector<32x128xf32>
    %187 = arith.select %169, %186, %159 : vector<32x128xi1>, vector<32x128xf32>
    %cst_126 = arith.constant dense<0x7F800000> : vector<32xf32>
    %188 = vector.multi_reduction <minimumf>, %187, %cst_126 [1] : vector<32x128xf32> to vector<32xf32>
    %189 = vector.shape_cast %188 : vector<32xf32> to vector<32x1xf32>
    %190 = vector.broadcast %189 : vector<32x1xf32> to vector<32x128xf32>
    %191 = arith.cmpf ole, %187, %190 : vector<32x128xf32>
    %c128_i32_127 = arith.constant 128 : i32
    %192 = vector.broadcast %c128_i32_127 : i32 to vector<32x128xi32>
    %193 = arith.select %191, %12, %192 : vector<32x128xi1>, vector<32x128xi32>
    %cst_128 = arith.constant dense<2147483647> : vector<32xi32>
    %194 = vector.multi_reduction <minsi>, %193, %cst_128 [1] : vector<32x128xi32> to vector<32xi32>
    %195 = vector.shape_cast %194 : vector<32xi32> to vector<32x1xi32>
    %196 = vector.broadcast %195 : vector<32x1xi32> to vector<32x128xi32>
    %197 = arith.cmpi eq, %12, %196 : vector<32x128xi32>
    %198 = arith.extui %197 : vector<32x128xi1> to vector<32x128xi32>
    %199 = arith.sitofp %198 : vector<32x128xi32> to vector<32x128xf32>
    %200 = vector.extract_strided_slice %199 {offsets = [0, 0], sizes = [16, 128], strides = [1, 1]} : vector<32x128xf32> to vector<16x128xf32>
    %c0_129 = arith.constant 0 : index
    %c0_130 = arith.constant 0 : index
    %c0_131 = arith.constant 0 : index
    %201 = vector.load %arg2[%c0_129, %c0_130, %c0_131] : memref<2x128x35xf32, #tpu.memory_space<vmem>>, vector<1x128x35xf32>
    %202 = vector.shape_cast %201 : vector<1x128x35xf32> to vector<128x35xf32>
    %cst_132 = arith.constant dense<0.000000e+00> : vector<16x35xf32>
    %203 = tpu.matmul %200, %202, %cst_132 {dimension_numbers = #tpu.dot_dimension_numbers<[1], [0], [0], [1], [0, 0, 1, 1], [], []>} : vector<16x128xf32>, vector<128x35xf32>, vector<16x35xf32> -> vector<16x35xf32>
    %c0_133 = arith.constant 0 : index
    %c6 = arith.constant 6 : index
    %c0_134 = arith.constant 0 : index
    %c0_135 = arith.constant 0 : index
    %204 = vector.load %arg4[%c0_133, %c6, %c0_134, %c0_135] : memref<2x8x16x35xf32, #tpu.memory_space<vmem>>, vector<1x1x16x35xf32>
    %205 = vector.shape_cast %204 : vector<1x1x16x35xf32> to vector<16x35xf32>
    %206 = vector.shape_cast %203 : vector<16x35xf32> to vector<1x1x16x35xf32>
    tpu.vector_store %arg4[%c0_133, %c6, %c0_134, %c0_135], %206 {strides = array<i32>} : memref<2x8x16x35xf32, #tpu.memory_space<vmem>>, vector<1x1x16x35xf32>,
    %207 = vector.extract_strided_slice %199 {offsets = [16, 0], sizes = [16, 128], strides = [1, 1]} : vector<32x128xf32> to vector<16x128xf32>
    %c1_136 = arith.constant 1 : index
    %c0_137 = arith.constant 0 : index
    %c0_138 = arith.constant 0 : index
    %208 = vector.load %arg2[%c1_136, %c0_137, %c0_138] : memref<2x128x35xf32, #tpu.memory_space<vmem>>, vector<1x128x35xf32>
    %209 = vector.shape_cast %208 : vector<1x128x35xf32> to vector<128x35xf32>
    %cst_139 = arith.constant dense<0.000000e+00> : vector<16x35xf32>
    %210 = tpu.matmul %207, %209, %cst_139 {dimension_numbers = #tpu.dot_dimension_numbers<[1], [0], [0], [1], [0, 0, 1, 1], [], []>} : vector<16x128xf32>, vector<128x35xf32>, vector<16x35xf32> -> vector<16x35xf32>
    %c1_140 = arith.constant 1 : index
    %c6_141 = arith.constant 6 : index
    %c0_142 = arith.constant 0 : index
    %c0_143 = arith.constant 0 : index
    %211 = vector.load %arg4[%c1_140, %c6_141, %c0_142, %c0_143] : memref<2x8x16x35xf32, #tpu.memory_space<vmem>>, vector<1x1x16x35xf32>
    %212 = vector.shape_cast %211 : vector<1x1x16x35xf32> to vector<16x35xf32>
    %213 = vector.shape_cast %210 : vector<16x35xf32> to vector<1x1x16x35xf32>
    tpu.vector_store %arg4[%c1_140, %c6_141, %c0_142, %c0_143], %213 {strides = array<i32>} : memref<2x8x16x35xf32, #tpu.memory_space<vmem>>, vector<1x1x16x35xf32>,
    %cst_144 = arith.constant 0x7F800000 : f32
    %214 = vector.broadcast %cst_144 : f32 to vector<32x128xf32>
    %215 = arith.select %197, %214, %187 : vector<32x128xi1>, vector<32x128xf32>
    %cst_145 = arith.constant dense<0x7F800000> : vector<32xf32>
    %216 = vector.multi_reduction <minimumf>, %215, %cst_145 [1] : vector<32x128xf32> to vector<32xf32>
    %217 = vector.shape_cast %216 : vector<32xf32> to vector<32x1xf32>
    %218 = vector.broadcast %217 : vector<32x1xf32> to vector<32x128xf32>
    %219 = arith.cmpf ole, %215, %218 : vector<32x128xf32>
    %c128_i32_146 = arith.constant 128 : i32
    %220 = vector.broadcast %c128_i32_146 : i32 to vector<32x128xi32>
    %221 = arith.select %219, %12, %220 : vector<32x128xi1>, vector<32x128xi32>
    %cst_147 = arith.constant dense<2147483647> : vector<32xi32>
    %222 = vector.multi_reduction <minsi>, %221, %cst_147 [1] : vector<32x128xi32> to vector<32xi32>
    %223 = vector.shape_cast %222 : vector<32xi32> to vector<32x1xi32>
    %224 = vector.broadcast %223 : vector<32x1xi32> to vector<32x128xi32>
    %225 = arith.cmpi eq, %12, %224 : vector<32x128xi32>
    %226 = arith.extui %225 : vector<32x128xi1> to vector<32x128xi32>
    %227 = arith.sitofp %226 : vector<32x128xi32> to vector<32x128xf32>
    %228 = vector.extract_strided_slice %227 {offsets = [0, 0], sizes = [16, 128], strides = [1, 1]} : vector<32x128xf32> to vector<16x128xf32>
    %c0_148 = arith.constant 0 : index
    %c0_149 = arith.constant 0 : index
    %c0_150 = arith.constant 0 : index
    %229 = vector.load %arg2[%c0_148, %c0_149, %c0_150] : memref<2x128x35xf32, #tpu.memory_space<vmem>>, vector<1x128x35xf32>
    %230 = vector.shape_cast %229 : vector<1x128x35xf32> to vector<128x35xf32>
    %cst_151 = arith.constant dense<0.000000e+00> : vector<16x35xf32>
    %231 = tpu.matmul %228, %230, %cst_151 {dimension_numbers = #tpu.dot_dimension_numbers<[1], [0], [0], [1], [0, 0, 1, 1], [], []>} : vector<16x128xf32>, vector<128x35xf32>, vector<16x35xf32> -> vector<16x35xf32>
    %c0_152 = arith.constant 0 : index
    %c7 = arith.constant 7 : index
    %c0_153 = arith.constant 0 : index
    %c0_154 = arith.constant 0 : index
    %232 = vector.load %arg4[%c0_152, %c7, %c0_153, %c0_154] : memref<2x8x16x35xf32, #tpu.memory_space<vmem>>, vector<1x1x16x35xf32>
    %233 = vector.shape_cast %232 : vector<1x1x16x35xf32> to vector<16x35xf32>
    %234 = vector.shape_cast %231 : vector<16x35xf32> to vector<1x1x16x35xf32>
    tpu.vector_store %arg4[%c0_152, %c7, %c0_153, %c0_154], %234 {strides = array<i32>} : memref<2x8x16x35xf32, #tpu.memory_space<vmem>>, vector<1x1x16x35xf32>,
    %235 = vector.extract_strided_slice %227 {offsets = [16, 0], sizes = [16, 128], strides = [1, 1]} : vector<32x128xf32> to vector<16x128xf32>
    %c1_155 = arith.constant 1 : index
    %c0_156 = arith.constant 0 : index
    %c0_157 = arith.constant 0 : index
    %236 = vector.load %arg2[%c1_155, %c0_156, %c0_157] : memref<2x128x35xf32, #tpu.memory_space<vmem>>, vector<1x128x35xf32>
    %237 = vector.shape_cast %236 : vector<1x128x35xf32> to vector<128x35xf32>
    %cst_158 = arith.constant dense<0.000000e+00> : vector<16x35xf32>
    %238 = tpu.matmul %235, %237, %cst_158 {dimension_numbers = #tpu.dot_dimension_numbers<[1], [0], [0], [1], [0, 0, 1, 1], [], []>} : vector<16x128xf32>, vector<128x35xf32>, vector<16x35xf32> -> vector<16x35xf32>
    %c1_159 = arith.constant 1 : index
    %c7_160 = arith.constant 7 : index
    %c0_161 = arith.constant 0 : index
    %c0_162 = arith.constant 0 : index
    %239 = vector.load %arg4[%c1_159, %c7_160, %c0_161, %c0_162] : memref<2x8x16x35xf32, #tpu.memory_space<vmem>>, vector<1x1x16x35xf32>
    %240 = vector.shape_cast %239 : vector<1x1x16x35xf32> to vector<16x35xf32>
    %241 = vector.shape_cast %238 : vector<16x35xf32> to vector<1x1x16x35xf32>
    tpu.vector_store %arg4[%c1_159, %c7_160, %c0_161, %c0_162], %241 {strides = array<i32>} : memref<2x8x16x35xf32, #tpu.memory_space<vmem>>, vector<1x1x16x35xf32>,
    return
  }
  func.func @transform_0(%arg0: i32) -> (i32, i32, i32) {
    %c0_i32 = arith.constant 0 : i32
    %c0_i32_0 = arith.constant 0 : i32
    %c0_i32_1 = arith.constant 0 : i32
    return %arg0, %c0_i32, %c0_i32_0 : i32, i32, i32
  }
  func.func @transform_1(%arg0: i32) -> (i32, i32, i32) {
    %c0_i32 = arith.constant 0 : i32
    %c0_i32_0 = arith.constant 0 : i32
    %c0_i32_1 = arith.constant 0 : i32
    return %arg0, %c0_i32, %c0_i32_0 : i32, i32, i32
  }
  func.func @transform_2(%arg0: i32) -> (i32, i32, i32) {
    %c0_i32 = arith.constant 0 : i32
    %c0_i32_0 = arith.constant 0 : i32
    %c0_i32_1 = arith.constant 0 : i32
    return %arg0, %c0_i32, %c0_i32_0 : i32, i32, i32
  }
  func.func @transform_3(%arg0: i32) -> (i32, i32, i32, i32) {
    %c0_i32 = arith.constant 0 : i32
    %c0_i32_0 = arith.constant 0 : i32
    %c0_i32_1 = arith.constant 0 : i32
    %c0_i32_2 = arith.constant 0 : i32
    return %arg0, %c0_i32, %c0_i32_0, %c0_i32_1 : i32, i32, i32, i32
  }
}

</mosaic_0001>

<bundles_post_ra>
// kernel: tpu_custom_call.1
= control target key start
LH: loop header
LB: loop body
LE: loop exit
PB: predicated region body
PF: predicated region fallthrough
CT: control target
= control target key end

     0   :  { %9 = vsyncpa [#allocation4], 0  ;;  %s4884_s0 = inlined_call_operand.hbm [shape: f32[2,3,128], index: 0, kind: input, shape index: {}]   ;;  %s4885_s1 = inlined_call_operand.hbm [shape: f32[2,128,35], index: 1, kind: input, shape index: {}]   ;;  %s4886_s2 = inlined_call_operand.hbm [shape: f32[2,16,35], index: 2, kind: output, shape index: {0}]   ;;  %s4887_s3 = inlined_call_operand.hbm [shape: f32[2,8,16,35], index: 3, kind: output, shape index: {1}]  }
   0x1   :  { %10 = vsyncpa [#allocation7], 0 }
   0x2   :  { %11 = vsyncpa [#allocation5], 0 }
   0x3   :  { %12 = vsyncpa [#allocation10], 0  ;;  %s4023_s12 = smov [#allocation3]   ;;  %s3895_s16 = scalar_lea.hbm %s4884_s0, 128 }
   0x4   :  { %s18_s13 = sshll.u32 %s4023_s12, 4  ;;  %p3896_p0 = scmp.ne.s32.totalorder %s4884_s0, %s3895_s16  ;;  %s19_s13 = int_to_ptr.vmem [resolvable:$true] %s18_s13 }
   0x5   :  { %p3899_p1 = scmp.lt.u32.totalorder %s3895_s16, %s4884_s0 }
   0x7   :  { %p3901_p2 = pnand %p3899_p1, %p3896_p0 }
   0x9   :  { %3904 = shalt.err (!%p3901_p2)
}
   0xa   :  { %s3905_s21 = scalar_lea.vmem %s19_s13, 128  ;;  %p3910_p4 = scmp.lt.s32.totalorder %s19_s13, %s19_s13 }
   0xb   :  { %p3906_p3 = scmp.ne.s32.totalorder %s19_s13, %s3905_s21  ;;  %p3911_p5 = scmp.lt.s32.totalorder %s3905_s21, %s3905_s21 }
   0xd   :  { %p3912_p6 = por %p3911_p5, %p3910_p4 }
   0xf   :  { %p3913_p7 = pnand %p3912_p6, %p3906_p3 }
  0x11   :  { %3916 = shalt.err (!%p3913_p7)
}
  0x12   :  { %s4024_s22 = smov 64   ;;  %s4025_s23 = smov 4  }
  0x13   :  { %24 = dma.hbm_to_vmem [thread:$0]  %s4884_s0, 128, %s19_s13, [#allocation4], %s4024_s22, %s4024_s22, %s4025_s23  }
  0x14   :  { %s4026_s26 = smov [#allocation6]   ;;  %s3917_s30 = scalar_lea.hbm %s4885_s1, 4096 }
  0x15   :  { %s30_s27 = sshll.u32 %s4026_s26, 4  ;;  %p3918_p8 = scmp.ne.s32.totalorder %s4885_s1, %s3917_s30  ;;  %s31_s27 = int_to_ptr.vmem [resolvable:$true] %s30_s27 }
  0x16   :  { %p3921_p9 = scmp.lt.u32.totalorder %s3917_s30, %s4885_s1 }
  0x18   :  { %p3923_p10 = pnand %p3921_p9, %p3918_p8 }
  0x1a   :  { %3926 = shalt.err (!%p3923_p10)
}
  0x1b   :  { %s3927_s8 = scalar_lea.vmem %s31_s27, 4096  ;;  %p3932_p12 = scmp.lt.s32.totalorder %s31_s27, %s31_s27 }
  0x1c   :  { %p3928_p11 = scmp.ne.s32.totalorder %s31_s27, %s3927_s8  ;;  %p3933_p13 = scmp.lt.s32.totalorder %s3927_s8, %s3927_s8 }
  0x1e   :  { %p3934_p0 = por %p3933_p13, %p3932_p12 }
  0x20   :  { %p3935_p1 = pnand %p3934_p0, %p3928_p11 }
  0x22   :  { %3938 = shalt.err (!%p3935_p1)
}
  0x23   :  { %s4027_s0 = smov 128   ;;  %s4028_s9 = smov 8  }
  0x24   :  { %36 = dma.hbm_to_vmem [thread:$0]  %s4885_s1, 4096, %s31_s27, [#allocation7], %s4027_s0, %s4027_s0, %s4028_s9  }
  0x25   :  { %3999 = dma.done.wait [#allocation4], 128  }
  0x26   :  { %4000 = vsyncadd [#allocation4], 4294967168 }
  0x27   :  { %4001 = dma.done.wait [#allocation7], 4096  }
  0x28   :  { %4002 = vsyncadd [#allocation7], 4294963200  ;;  %v45_v0 = vlaneseq  ;;  %v4081_v2 = vld [vmem:[#allocation3] sm:$0x7]  ;;  %v4083_v3 = vld [vmem:[#allocation3 + $0x4] sm:$0x7] }
  0x29   :  { %v4085_v4 = vmov 0   ;;  %v4087_v5 = vmov 1e+10   ;;  %v4089_v6 = vmov 1e+10   ;;  %s4091_s12 = smov 0  }
  0x2a   :  { %v4079_v1 = vand.u32 127, %v45_v0 }
  0x2b LB: > { %v59_v7 = vrot.slane %v4083_v3, 7  ;;  %vm60_vm0 = vcmask 1041409   ;;  %vm64_vm1 = vcmask 1041408   ;;  %v99_v8 = vrot.slane %v4081_v2, 2  ;;  %s124_s1 = scalar_lea.vmem [#allocation2], %s4021_s12  ;;  %s52_s12 = sadd.s32 1, %s4021_s12   ;;  %s4021_s12 = sphi %s4091_s12, %s52_s12   ;;  %v4017_v6 = vphi %v4089_v6, %v129_v6   ;;  %v4013_v5 = vphi %v4087_v5, %v130_v5   ;;  %v4009_v4 = vphi %v4085_v4, %v163_v4  }
  0x2c   : > { %v100_v9 = vrot.slane %v4083_v3, 1  ;;  %v76_v10 = vrot.slane %v4081_v2, 1  ;;  %vm56_vm2 = vcmp.eq.s32.totalorder %v4079_v1, %v4009_v4  ;;  %p49_p2 = scmp.ge.s32.totalorder %s52_s12, 16  }
  0x2d   : > { %v61_v11 = vsel %vm60_vm0, %v59_v7, %v4081_v2  ;;  %s4030_s13 = smov (%p49_p2), [#allocation8]  }
  0x2e   : > { %v63_v12 = vsel %vm56_vm2, %v61_v11, 0.0  ;;  %v101_v13 = vsel %vm60_vm0, %v100_v9, %v99_v8  ;;  %v77_v14 = vsel %vm60_vm0, %v4083_v3, %v76_v10  ;;  %s2383_s14 = sshll.u32 (%p49_p2), %s4030_s13, 4  ;;  %s2384_s14 = int_to_ptr.vmem [resolvable:$true] %s2383_s14 }
  0x2f   : > { %v65_v15 = vsel %vm64_vm1, %v63_v12, 0.0  ;;  %v103_v16 = vsel %vm56_vm2, %v101_v13, 0.0  ;;  %v79_v17 = vsel %vm56_vm2, %v77_v14, 0.0  ;;  %s3939_s15 = scalar_lea.vmem (%p49_p2), %s2384_s14, 512  ;;  %p3944_p4 = scmp.lt.s32.totalorder (%p49_p2), %s2384_s14, %s2384_s14 }
  0x30   : > { %66 = vadd.xlane.f32.xlu0 %v65_v15  ;;  %v104_v18 = vsel %vm64_vm1, %v103_v16, 0.0  ;;  %v80_v19 = vsel %vm64_vm1, %v79_v17, 0.0  ;;  %p3940_p3 = scmp.ne.s32.totalorder (%p49_p2), %s2384_s14, %s3939_s15  ;;  %p3945_p5 = scmp.lt.s32.totalorder (%p49_p2), %s3939_s15, %s3939_s15 }
  0x31   : > { %105 = vadd.xlane.f32.xlu1 %v104_v18 }
  0x32   :  { %p3946_p6 = por (%p49_p2), %p3945_p5, %p3944_p4 }
  0x34   : > { %81 = vadd.xlane.f32.xlu0 %v80_v19  ;;  %p3947_p7 = pnand (%p49_p2), %p3946_p6, %p3940_p3 }
  0xbd   : > { %v67_v20 = vpop.xlane.xlu0 %66 }
  0xbe   : > { %v69_v21 = vrot.slane %v67_v20, 1  ;;  %v106_v22 = vpop.xlane.xlu1 %105  ;;  %v72_v32 = vsub.f32 %v4081_v2, %v67_v20 }
  0xbf   : > { %v108_v23 = vrot.slane %v106_v22, 6  ;;  %v109_v24 = vrot.slane %v106_v22, 7 }
  0xc0   : > { %v73_v25 = vsub.f32 %v4083_v3, %v69_v21  ;;  %v74_v40 = vmul.f32 %v72_v32, %v72_v32 }
  0xc1   : > { %v113_v26 = vsub.f32 %v4083_v3, %v109_v24  ;;  %v82_v27 = vpop.xlane.xlu0 %81  ;;  %v112_v28 = vsub.f32 %v4081_v2, %v108_v23  ;;  %v252_v24 = vld [vmem:[#allocation6] sm:$0xff] (%p49_p2) }
  0xc2   : > { %v84_v29 = vrot.slane %v82_v27, 7  ;;  %v88_v30 = vsub.f32 %v4083_v3, %v82_v27  ;;  %v75_v35 = vmul.f32 %v73_v25, %v73_v25  ;;  %v253_v25 = vld [vmem:[#allocation6 + $0x8] sm:$0xff] (%p49_p2) }
  0xc3   : > { %v115_v31 = vmul.f32 %v113_v26, %v113_v26  ;;  %v114_v36 = vmul.f32 %v112_v28, %v112_v28  ;;  %v254_v26 = vld [vmem:[#allocation6 + $0x10] sm:$0xff] (%p49_p2)  ;;  %v4178_v27 = vpack.c.bf16 (%p49_p2), %v253_v25, %v252_v24  ;;  %v255_v28 = vld [vmem:[#allocation6 + $0x18] sm:$0xff] (%p49_p2)  ;;  %v362_v24 = vld [vmem:[#allocation6 + $0xe8] sm:$0xff] (%p49_p2) }
  0xc4   : > { %v87_v33 = vsub.f32 %v4081_v2, %v84_v29  ;;  %v90_v34 = vmul.f32 %v88_v30, %v88_v30  ;;  %v349_v29 = vld [vmem:[#allocation6 + $0x80] sm:$0xff] (%p49_p2)  ;;  %v350_v30 = vld [vmem:[#allocation6 + $0x88] sm:$0xff] (%p49_p2) }
  0xc5   : > { %v119_v37 = vrot.slane %v115_v31, 2  ;;  %v118_v43 = vrot.slane %v114_v36, 2  ;;  %v4180_v31 = vpack.c.bf16 (%p49_p2), %v255_v28, %v254_v26  ;;  %v4182_v32 = vpack.c.bf16 (%p49_p2), %v350_v30, %v349_v29  ;;  %3343 = vmatprep.subr.bf16.mxu0 (%p49_p2), %v4178_v27  ;;  %v352_v36 = vld [vmem:[#allocation6 + $0x98] sm:$0xff] (%p49_p2)  ;;  %v363_v26 = vld [vmem:[#allocation6 + $0xf0] sm:$0xff] (%p49_p2) }
  0xc6   : > { %v89_v38 = vmul.f32 %v87_v33, %v87_v33  ;;  %v94_v39 = vrot.slane %v90_v34, 1  ;;  %v256_v33 = vld [vmem:[#allocation6 + $0x20] sm:$0xff] (%p49_p2)  ;;  %v257_v34 = vld [vmem:[#allocation6 + $0x28] sm:$0xff] (%p49_p2)  ;;  %3345 = vmatpush3.bf16.msra.mxu0 (%p49_p2), %v4178_v27  ;;  %v364_v28 = vld [vmem:[#allocation6 + $0xf8] sm:$0xff] (%p49_p2) }
  0xc7   :  { %3375 = vmatprep.subr.bf16.mxu1 (%p49_p2), %v4182_v32  ;;  %3347 = vmatprep.subr.bf16.mxu0 (%p49_p2), %v4180_v31  ;;  %v4246_v29 = vpack.c.bf16 (%p49_p2), %v364_v28, %v363_v26 }
  0xc8   : > { %v93_v41 = vrot.slane %v89_v38, 1  ;;  %v98_v42 = vadd.f32 %v94_v39, %v75_v35  ;;  %v351_v35 = vld [vmem:[#allocation6 + $0x90] sm:$0xff] (%p49_p2)  ;;  %v353_v38 = vld [vmem:[#allocation6 + $0xa0] sm:$0xff] (%p49_p2)  ;;  %v354_v39 = vld [vmem:[#allocation6 + $0xa8] sm:$0xff] (%p49_p2)  ;;  %3377 = vmatpush3.bf16.msra.mxu1 (%p49_p2), %v4182_v32 }
  0xca   : > { %v97_v44 = vadd.f32 %v93_v41, %v74_v40  ;;  %v123_v45 = vadd.f32 %v119_v37, %v98_v42  ;;  %v4187_v37 = vpack.c.bf16 (%p49_p2), %v352_v36, %v351_v35  ;;  %v4191_v40 = vpack.c.bf16 (%p49_p2), %v257_v34, %v256_v33  ;;  %v258_v41 = vld [vmem:[#allocation6 + $0x30] sm:$0xff] (%p49_p2)  ;;  %v259_v42 = vld [vmem:[#allocation6 + $0x38] sm:$0xff] (%p49_p2)  ;;  %3349 = vmatpush3.bf16.msra.mxu0 (%p49_p2), %v4180_v31 }
  0xcc   : > { %v122_v46 = vadd.f32 %v118_v43, %v97_v44  ;;  %2429 = vst [vmem:[%s124_s1 + $0x10] sm:$0x1] %v123_v45  ;;  %v130_v5 = vmin.f32 %v4013_v5, %v123_v45   ;;  %3379 = vmatprep.subr.bf16.mxu1 (%p49_p2), %v4187_v37  ;;  %v4194_v43 = vpack.c.bf16 (%p49_p2), %v354_v39, %v353_v38  ;;  %v355_v44 = vld [vmem:[#allocation6 + $0xb0] sm:$0xff] (%p49_p2)  ;;  %v356_v45 = vld [vmem:[#allocation6 + $0xb8] sm:$0xff] (%p49_p2) }
  0xcd   :  { %3351 = vmatprep.subr.bf16.mxu0 (%p49_p2), %v4191_v40  ;;  %3381 = vmatpush3.bf16.msra.mxu1 (%p49_p2), %v4187_v37 }
  0xce   : > { %125 = vst [vmem:[%s124_s1] sm:$0x1] %v122_v46  ;;  %v129_v6 = vmin.f32 %v4017_v6, %v122_v46   ;;  %v133_v47 = vrot.slane %v130_v5, 7  ;;  %v4199_v46 = vpack.c.bf16 (%p49_p2), %v259_v42, %v258_v41  ;;  %3383 = vmatprep.subr.bf16.mxu1 (%p49_p2), %v4194_v43  ;;  %3353 = vmatpush3.bf16.msra.mxu0 (%p49_p2), %v4191_v40 }
  0xd0   : > { %v134_v48 = vsel %vm60_vm0, %v133_v47, %v129_v6  ;;  %v260_v47 = vld [vmem:[#allocation6 + $0x40] sm:$0xff] (%p49_p2)  ;;  %3355 = vmatprep.subr.bf16.mxu0 (%p49_p2), %v4199_v46 }
  0xd1   : > { %v136_v49 = vsel %vm64_vm1, %v134_v48, -inf  ;;  %v261_v48 = vld [vmem:[#allocation6 + $0x48] sm:$0xff] (%p49_p2)  ;;  %3385 = vmatpush3.bf16.msra.mxu1 (%p49_p2), %v4194_v43 }
  0xd2   : > { %137 = vmax.xlane.f32.xlu1 %v136_v49  ;;  %v4202_v49 = vpack.c.bf16 (%p49_p2), %v356_v45, %v355_v44  ;;  %3357 = vmatpush3.bf16.msra.mxu0 (%p49_p2), %v4199_v46 }
  0xd4   :  { %3387 = vmatprep.subr.bf16.mxu1 (%p49_p2), %v4202_v49 }
  0xd5   :  { %v4134_v8 = vld [vmem:[#allocation2] sm:$0xff] (%p49_p2)  ;;  %v4136_v9 = vld [vmem:[#allocation2 + $0x8] sm:$0xff] (%p49_p2)  ;;  %v4140_v10 = vld [vmem:[#allocation2 + $0x10] sm:$0xff] (%p49_p2)  ;;  %3389 = vmatpush3.bf16.msra.mxu1 (%p49_p2), %v4202_v49 }
  0xd6   :  { %v4142_v11 = vld [vmem:[#allocation2 + $0x18] sm:$0xff] (%p49_p2) }
 0x15f   : > { %v138_v50 = vpop.xlane.xlu1 %137 }
 0x160   : > { %v140_v51 = vrot.slane %v138_v50, 1  ;;  %vm143_vm3 = vcmp.ge.f32.partialorder %v129_v6, %v138_v50  ;;  %v357_v50 = vld [vmem:[#allocation6 + $0xc0] sm:$0xff] (%p49_p2) }
 0x161   : > { %v145_v54 = vsel %vm143_vm3, %v4079_v1, 128 }
 0x162   : > { %vm144_vm4 = vcmp.ge.f32.partialorder %v130_v5, %v140_v51  ;;  %v358_v51 = vld [vmem:[#allocation6 + $0xc8] sm:$0xff] (%p49_p2) }
 0x163   : > { %v146_v52 = vsel %vm144_vm4, %v4079_v1, 128 }
 0x164   : > { %v147_v53 = vrot.slane %v146_v52, 7  ;;  %v4207_v52 = vpack.c.bf16 (%p49_p2), %v261_v48, %v260_v47 }
 0x166   : > { %v148_v55 = vsel %vm60_vm0, %v147_v53, %v145_v54  ;;  %v262_v53 = vld [vmem:[#allocation6 + $0x50] sm:$0xff] (%p49_p2)  ;;  %v263_v54 = vld [vmem:[#allocation6 + $0x58] sm:$0xff] (%p49_p2)  ;;  %3359 = vmatprep.subr.bf16.mxu0 (%p49_p2), %v4207_v52 }
 0x167   : > { %v149_v56 = vsel %vm64_vm1, %v148_v55, 2147483647  ;;  %v4210_v55 = vpack.c.bf16 (%p49_p2), %v358_v51, %v357_v50  ;;  %3361 = vmatpush3.bf16.msra.mxu0 (%p49_p2), %v4207_v52  ;;  %v4029_v51 = vmov (%p49_p2), 1.0  }
 0x168   : > { %v151_v57 = vshra.s32 %v149_v56, 16  ;;  %v150_v59 = vand.u32 65535, %v149_v56  ;;  %v4215_v56 = vpack.c.bf16 (%p49_p2), %v263_v54, %v262_v53 }
 0x169   :  { %3391 = vmatprep.subr.bf16.mxu1 (%p49_p2), %v4210_v55 }
 0x16a   : > { %v153_v58 = vcvt.s32.f32 %v151_v57  ;;  %v152_v61 = vcvt.s32.f32 %v150_v59  ;;  %3363 = vmatprep.subr.bf16.mxu0 (%p49_p2), %v4215_v56  ;;  %3393 = vmatpush3.bf16.msra.mxu1 (%p49_p2), %v4210_v55 }
 0x16b   :  { %3365 = vmatpush3.bf16.msra.mxu0 (%p49_p2), %v4215_v56 }
 0x16c   : > { %154 = vmin.xlane.f32.xlu0 %v153_v58 }
 0x170   :  { %168 = vmin.xlane.f32.xlu0 (%p49_p2), %v4134_v8 }
 0x174   :  { %172 = vmin.xlane.f32.xlu0 (%p49_p2), %v4140_v10 }
 0x1f9   : > { %v155_v60 = vpop.xlane.xlu0 %154 }
 0x1fa   : > { %vm156_vm5 = vcmp.eq.f32.partialorder %v153_v58, %v155_v60  ;;  %v161_v63 = vcvt.f32.s32 %v155_v60 }
 0x1fb   : > { %v157_v62 = vsel %vm156_vm5, %v152_v61, inf }
 0x1fc   : > { %158 = vmin.xlane.f32.xlu1 %v157_v62  ;;  %v162_v4 = vshll.u32 %v161_v63, 16 }
 0x1fd   :  { %v169_v6 = vpop.xlane.xlu0 (%p49_p2), %168 }
 0x1fe   :  { %vm176_vm6 = vcmp.le.f32.partialorder (%p49_p2), %v4134_v8, %v169_v6 }
 0x1ff   :  { %v4149_v2 = vsel (%p49_p2), %vm176_vm6, %v4079_v1, 128  ;;  %vm343_vm6 = vcmask (%p49_p2), 285696  }
 0x200   :  { %170 = vmin.xlane.f32.xlu1 (%p49_p2), %v4136_v9  ;;  %v185_v5 = vshra.s32 (%p49_p2), %v4149_v2, 16  ;;  %v184_v57 = vand.u32 (%p49_p2), 65535, %v4149_v2 }
 0x201   :  { %v173_v14 = vpop.xlane.xlu0 (%p49_p2), %172 }
 0x202   :  { %vm178_vm8 = vcmp.le.f32.partialorder (%p49_p2), %v4140_v10, %v173_v14  ;;  %v4157_v16 = vcvt.s32.f32 (%p49_p2), %v185_v5  ;;  %v186_v58 = vcvt.s32.f32 (%p49_p2), %v184_v57  ;;  %v264_v14 = vld [vmem:[#allocation6 + $0x60] sm:$0xff] (%p49_p2) }
 0x203   :  { %v4160_v17 = vsel (%p49_p2), %vm178_vm8, %v4079_v1, 128 }
 0x204   :  { %174 = vmin.xlane.f32.xlu1 (%p49_p2), %v4142_v11  ;;  %v213_v18 = vshra.s32 (%p49_p2), %v4160_v17, 16  ;;  %188 = vmin.xlane.f32.xlu0 (%p49_p2), %v4157_v16  ;;  %v212_v60 = vand.u32 (%p49_p2), 65535, %v4160_v17 }
 0x206   :  { %v4171_v22 = vcvt.s32.f32 (%p49_p2), %v213_v18  ;;  %v360_v18 = vld [vmem:[#allocation6 + $0xd8] sm:$0xff] (%p49_p2) }
 0x208   :  { %216 = vmin.xlane.f32.xlu1 (%p49_p2), %v4171_v22 }
 0x286   :  { %51 = sbr.rel (!%p49_p2) target bundleno = 43 (0x2b), region = 70 }
 0x289   : > { %v159_v0 = vpop.xlane.xlu1 %158 }
 0x28a   : > { %v160_v7 = vcvt.f32.s32 %v159_v0  ;;  %v214_v0 = vcvt.s32.f32 (%p49_p2), %v212_v60 }
 0x28c   : > { %v163_v4 = vadd.s32 %v162_v4, %v160_v7  }
 0x28d   :  { %v171_v12 = vpop.xlane.xlu1 %170 }
 0x28e   :  { %vm177_vm7 = vcmp.le.f32.partialorder %v4136_v9, %v171_v12 }
 0x28f   :  { %v4152_v3 = vsel %vm177_vm7, %v4079_v1, 128 }
 0x290   :  { %v199_v13 = vshra.s32 %v4152_v3, 16  ;;  %v198_v59 = vand.u32 65535, %v4152_v3 }
 0x291   :  { %v175_v15 = vpop.xlane.xlu1 %174  ;;  %v189_v61 = vpop.xlane.xlu0 %188 }
 0x292   :  { %vm179_vm9 = vcmp.le.f32.partialorder %v4142_v11, %v175_v15  ;;  %v4168_v20 = vcvt.s32.f32 %v199_v13  ;;  %vm190_vm10 = vcmp.eq.f32.partialorder %v4157_v16, %v189_v61  ;;  %v200_v63 = vcvt.s32.f32 %v198_v59  ;;  %v265_v15 = vld [vmem:[#allocation6 + $0x68] sm:$0xff]  ;;  %v359_v16 = vld [vmem:[#allocation6 + $0xd0] sm:$0xff] }
 0x293   :  { %v4166_v19 = vsel %vm179_vm9, %v4079_v1, 128  ;;  %v191_v62 = vsel %vm190_vm10, %v186_v58, inf  ;;  %v4230_v17 = vpack.c.bf16 %v265_v15, %v264_v14  ;;  %v195_v30 = vcvt.f32.s32 %v189_v61 }
 0x294   :  { %v227_v21 = vshra.s32 %v4166_v19, 16  ;;  %202 = vmin.xlane.f32.xlu0 %v4168_v20  ;;  %v226_v4 = vand.u32 65535, %v4166_v19  ;;  %v4232_v19 = vpack.c.bf16 %v360_v18, %v359_v16 }
 0x295   :  { %v217_v7 = vpop.xlane.xlu1 %216  ;;  %3367 = vmatprep.subr.bf16.mxu0 %v4230_v17  ;;  %v196_v36 = vshll.u32 %v195_v30, 16 }
 0x296   :  { %v4175_v23 = vcvt.s32.f32 %v227_v21  ;;  %vm218_vm11 = vcmp.eq.f32.partialorder %v4171_v22, %v217_v7  ;;  %v228_v3 = vcvt.s32.f32 %v226_v4  ;;  %3395 = vmatprep.subr.bf16.mxu1 %v4232_v19  ;;  %3369 = vmatpush3.bf16.msra.mxu0 %v4230_v17  ;;  %v267_v21 = vld [vmem:[#allocation6 + $0x78] sm:$0xff]  ;;  %v361_v22 = vld [vmem:[#allocation6 + $0xe0] sm:$0xff]  ;;  %v223_v33 = vcvt.f32.s32 %v217_v7 }
 0x297   :  { %v219_v12 = vsel %vm218_vm11, %v214_v0, inf  ;;  %3397 = vmatpush3.bf16.msra.mxu1 %v4232_v19  ;;  %v4240_v25 = vpack.c.bf16 %v362_v24, %v361_v22 }
 0x298   :  { %230 = vmin.xlane.f32.xlu1 %v4175_v23  ;;  %192 = vmin.xlane.f32.xlu0 %v191_v62  ;;  %v224_v41 = vshll.u32 %v223_v33, 16 }
 0x299   :  { %3399 = vmatprep.subr.bf16.mxu1 %v4240_v25 }
 0x29b   :  { %3401 = vmatpush3.bf16.msra.mxu1 %v4240_v25 }
 0x29c   :  { %220 = vmin.xlane.f32.xlu1 %v219_v12  ;;  %3403 = vmatprep.subr.bf16.mxu1 %v4246_v29 }
 0x29f   :  { %3405 = vmatpush3.bf16.msra.mxu1 %v4246_v29 }
 0x2a0   :  { %3439 = vmatprep.subr.bf16.mxu1 %v4182_v32 }
 0x321   :  { %v203_v6 = vpop.xlane.xlu0 %202 }
 0x322   :  { %vm204_vm12 = vcmp.eq.f32.partialorder %v4168_v20, %v203_v6  ;;  %v266_v20 = vld [vmem:[#allocation6 + $0x70] sm:$0xff]  ;;  %v209_v34 = vcvt.f32.s32 %v203_v6 }
 0x323   :  { %v205_v2 = vsel %vm204_vm12, %v200_v63, inf }
 0x324   :  { %206 = vmin.xlane.f32.xlu0 %v205_v2  ;;  %v210_v42 = vshll.u32 %v209_v34, 16 }
 0x325   :  { %v231_v5 = vpop.xlane.xlu1 %230  ;;  %v193_v35 = vpop.xlane.xlu0 %192 }
 0x326   :  { %vm232_vm13 = vcmp.eq.f32.partialorder %v4175_v23, %v231_v5  ;;  %v4238_v23 = vpack.c.bf16 %v267_v21, %v266_v20  ;;  %v194_v38 = vcvt.f32.s32 %v193_v35  ;;  %v237_v47 = vcvt.f32.s32 %v231_v5 }
 0x327   :  { %v233_v13 = vsel %vm232_vm13, %v228_v3, inf }
 0x328   :  { %234 = vmin.xlane.f32.xlu1 %v233_v13  ;;  %3371 = vmatprep.subr.bf16.mxu0 %v4238_v23  ;;  %v197_v39 = vadd.s32 %v196_v36, %v194_v38  ;;  %v238_v59 = vshll.u32 %v237_v47, 16 }
 0x329   :  { %3373 = vmatpush3.bf16.msra.mxu0 %v4238_v23  ;;  %v221_v44 = vpop.xlane.xlu1 %220 }
 0x32a   :  { %3407 = vmatprep.subr.bf16.mxu0 %v4178_v27  ;;  %v222_v48 = vcvt.f32.s32 %v221_v44  ;;  %vm240_vm14 = vcmp.eq.s32.totalorder %v4079_v1, %v197_v39 }
 0x32b   :  { %2814 = vmatprep.mubr.msk.f32.mxu0 %vm240_vm14, %v4029_v51  ;;  %v4255_v53 = vsel %vm240_vm14, inf, %v4134_v8 }
 0x32c   :  { %450 = vmin.xlane.f32.xlu0 %v4255_v53  ;;  %v225_v57 = vadd.s32 %v224_v41, %v222_v48 }
 0x32e   :  { %vm242_vm0 = vcmp.eq.s32.totalorder %v4079_v1, %v225_v57 }
 0x32f   :  { %2849 = vmatprep.mubr.msk.f32.mxu1 %vm242_vm0, %v4029_v51  ;;  %v4263_v61 = vsel %vm242_vm0, inf, %v4140_v10 }
 0x330   :  { %454 = vmin.xlane.f32.xlu1 %v4263_v61 }
 0x3b1   :  { %v207_v45 = vpop.xlane.xlu0 %206 }
 0x3b2   :  { %v208_v50 = vcvt.f32.s32 %v207_v45 }
 0x3b4   :  { %v211_v54 = vadd.s32 %v210_v42, %v208_v50 }
 0x3b5   :  { %v235_v58 = vpop.xlane.xlu1 %234 }
 0x3b6   :  { %vm241_vm15 = vcmp.eq.s32.totalorder %v4079_v1, %v211_v54  ;;  %v236_v60 = vcvt.f32.s32 %v235_v58 }
 0x3b7   :  { %2815 = vmatmul.mubr.msk.f32.vlgmr.msra.gmra.mrb[0].mxu0 %vm241_vm15, %v4029_v51  ;;  %v4266_v8 = vsel %vm241_vm15, inf, %v4136_v9 }
 0x3b8   :  { %v239_v62 = vadd.s32 %v238_v59, %v236_v60  ;;  %452 = vmin.xlane.f32.xlu0 %v4266_v8  ;;  %3409 = vmatpush3.bf16.msra.mxu0 %v4178_v27 }
 0x3b9   :  { %3411 = vmatprep.subr.bf16.mxu0 %v4180_v31  ;;  %v451_v9 = vpop.xlane.xlu0 %450 }
 0x3ba   :  { %vm243_vm1 = vcmp.eq.s32.totalorder %v4079_v1, %v239_v62  ;;  %vm458_vm2 = vcmp.le.f32.partialorder %v4255_v53, %v451_v9 }
 0x3bb   :  { %2850 = vmatmul.mubr.msk.f32.vlgmr.msra.gmra.mrb[0].mxu1 %vm243_vm1, %v4029_v51  ;;  %v4275_v63 = vsel %vm243_vm1, inf, %v4142_v11  ;;  %v462_v10 = vsel %vm458_vm2, %v4079_v1, 128 }
 0x3bc   :  { %456 = vmin.xlane.f32.xlu1 %v4275_v63  ;;  %3441 = vmatpush3.bf16.msra.mxu1 %v4182_v32  ;;  %v467_v11 = vshra.s32 %v462_v10, 16  ;;  %v466_v26 = vand.u32 65535, %v462_v10 }
 0x3bd   :  { %3413 = vmatpush3.bf16.msra.mxu0 %v4180_v31  ;;  %3443 = vmatprep.subr.bf16.mxu1 %v4187_v37  ;;  %v455_v0 = vpop.xlane.xlu1 %454 }
 0x3be   :  { %3415 = vmatprep.subr.bf16.mxu0 %v4191_v40  ;;  %vm460_vm3 = vcmp.le.f32.partialorder %v4263_v61, %v455_v0  ;;  %v469_v7 = vcvt.s32.f32 %v467_v11  ;;  %v468_v28 = vcvt.s32.f32 %v466_v26 }
 0x3bf   :  { %v464_v6 = vsel %vm460_vm3, %v4079_v1, 128 }
 0x3c0   :  { %3445 = vmatpush3.bf16.msra.mxu1 %v4187_v37  ;;  %v495_v2 = vshra.s32 %v464_v6, 16  ;;  %470 = vmin.xlane.f32.xlu0 %v469_v7  ;;  %v494_v30 = vand.u32 65535, %v464_v6 }
 0x3c1   :  { %3417 = vmatpush3.bf16.msra.mxu0 %v4191_v40  ;;  %3447 = vmatprep.subr.bf16.mxu1 %v4194_v43 }
 0x3c2   :  { %3419 = vmatprep.subr.bf16.mxu0 %v4199_v46  ;;  %v497_v13 = vcvt.s32.f32 %v495_v2  ;;  %v496_v36 = vcvt.s32.f32 %v494_v30 }
 0x3c4   :  { %3449 = vmatpush3.bf16.msra.mxu1 %v4194_v43  ;;  %498 = vmin.xlane.f32.xlu1 %v497_v13 }
 0x3c5   :  { %3421 = vmatpush3.bf16.msra.mxu0 %v4199_v46  ;;  %3451 = vmatprep.subr.bf16.mxu1 %v4202_v49 }
 0x3c6   :  { %3423 = vmatprep.subr.bf16.mxu0 %v4207_v52 }
 0x3c8   :  { %3453 = vmatpush3.bf16.msra.mxu1 %v4202_v49 }
 0x3c9   :  { %3425 = vmatpush3.bf16.msra.mxu0 %v4207_v52  ;;  %3455 = vmatprep.subr.bf16.mxu1 %v4210_v55 }
 0x3ca   :  { %3427 = vmatprep.subr.bf16.mxu0 %v4215_v56 }
 0x3cc   :  { %3457 = vmatpush3.bf16.msra.mxu1 %v4210_v55 }
 0x3cd   :  { %3429 = vmatpush3.bf16.msra.mxu0 %v4215_v56  ;;  %3459 = vmatprep.subr.bf16.mxu1 %v4232_v19 }
 0x3ce   :  { %3431 = vmatprep.subr.bf16.mxu0 %v4230_v17 }
 0x3d0   :  { %3461 = vmatpush3.bf16.msra.mxu1 %v4232_v19 }
 0x3d1   :  { %3433 = vmatpush3.bf16.msra.mxu0 %v4230_v17  ;;  %3463 = vmatprep.subr.bf16.mxu1 %v4240_v25 }
 0x3d2   :  { %3435 = vmatprep.subr.bf16.mxu0 %v4238_v23 }
 0x3d4   :  { %3465 = vmatpush3.bf16.msra.mxu1 %v4240_v25 }
 0x3d5   :  { %3437 = vmatpush3.bf16.msra.mxu0 %v4238_v23  ;;  %3467 = vmatprep.subr.bf16.mxu1 %v4246_v29 }
 0x3d6   :  { %3471 = vmatprep.subr.bf16.mxu0 %v4178_v27 }
 0x3d8   :  { %3469 = vmatpush3.bf16.msra.mxu1 %v4246_v29 }
 0x3d9   :  { %3503 = vmatprep.subr.bf16.mxu1 %v4182_v32 }
 0x445   :  { %v453_v4 = vpop.xlane.xlu0 %452 }
 0x446   :  { %vm459_vm4 = vcmp.le.f32.partialorder %v4266_v8, %v453_v4 }
 0x447   :  { %v463_v12 = vsel %vm459_vm4, %v4079_v1, 128 }
 0x448   :  { %v481_v3 = vshra.s32 %v463_v12, 16  ;;  %v480_v34 = vand.u32 65535, %v463_v12 }
 0x449   :  { %v457_v5 = vpop.xlane.xlu1 %456 }
 0x44a   :  { %vm461_vm5 = vcmp.le.f32.partialorder %v4275_v63, %v457_v5  ;;  %v483_v15 = vcvt.s32.f32 %v481_v3  ;;  %v482_v41 = vcvt.s32.f32 %v480_v34 }
 0x44b   :  { %v465_v14 = vsel %vm461_vm5, %v4079_v1, 128 }
 0x44c   :  { %v509_v16 = vshra.s32 %v465_v14, 16  ;;  %484 = vmin.xlane.f32.xlu0 %v483_v15  ;;  %v508_v38 = vand.u32 65535, %v465_v14 }
 0x44d   :  { %v471_v33 = vpop.xlane.xlu0 %470 }
 0x44e   :  { %v511_v18 = vcvt.s32.f32 %v509_v16  ;;  %vm472_vm7 = vcmp.eq.f32.partialorder %v469_v7, %v471_v33  ;;  %v510_v47 = vcvt.s32.f32 %v508_v38  ;;  %v477_v54 = vcvt.f32.s32 %v471_v33 }
 0x44f   :  { %v473_v35 = vsel %vm472_vm7, %v468_v28, inf }
 0x450   :  { %512 = vmin.xlane.f32.xlu1 %v511_v18  ;;  %474 = vmin.xlane.f32.xlu0 %v473_v35  ;;  %v478_v58 = vshll.u32 %v477_v54, 16 }
 0x451   :  { %v499_v39 = vpop.xlane.xlu1 %498 }
 0x452   :  { %vm500_vm8 = vcmp.eq.f32.partialorder %v497_v13, %v499_v39  ;;  %v505_v59 = vcvt.f32.s32 %v499_v39 }
 0x453   :  { %v501_v44 = vsel %vm500_vm8, %v496_v36, inf }
 0x454   :  { %502 = vmin.xlane.f32.xlu1 %v501_v44  ;;  %v506_v11 = vshll.u32 %v505_v59, 16 }
 0x48a   :  { %v2816_v20 = vpop.f32.mrb[0].mxu0 }
 0x48b   :  { %345 = vst.msk [vmem:[#allocation9 + $0x8] sm:$0xff] %vm343_vm6, %v2816_v20  ;;  %347 = vst.msk [vmem:[#allocation8 + $0x8] sm:$0xff] %vm343_vm6, %v2816_v20  ;;  %v334_v21 = vpop.f32.mrb[1].mxu0 }
 0x48c   :  { %344 = vst.msk [vmem:[#allocation9] sm:$0xff] %vm343_vm6, %v334_v21  ;;  %346 = vst.msk [vmem:[#allocation8] sm:$0xff] %vm343_vm6, %v334_v21 }
 0x48e   :  { %v2851_v22 = vpop.f32.mrb[0].mxu1 }
 0x48f   :  { %442 = vst.msk [vmem:[#allocation9 + $0x88] sm:$0xff] %vm343_vm6, %v2851_v22  ;;  %445 = vst.msk [vmem:[#allocation8 + $0x18] sm:$0xff] %vm343_vm6, %v2851_v22  ;;  %v431_v24 = vpop.f32.mrb[1].mxu1 }
 0x490   :  { %441 = vst.msk [vmem:[#allocation9 + $0x80] sm:$0xff] %vm343_vm6, %v431_v24  ;;  %444 = vst.msk [vmem:[#allocation8 + $0x10] sm:$0xff] %vm343_vm6, %v431_v24 }
 0x4d9   :  { %v485_v42 = vpop.xlane.xlu0 %484 }
 0x4da   :  { %vm486_vm9 = vcmp.eq.f32.partialorder %v483_v15, %v485_v42  ;;  %v491_v62 = vcvt.f32.s32 %v485_v42 }
 0x4db   :  { %v487_v45 = vsel %vm486_vm9, %v482_v41, inf }
 0x4dc   :  { %488 = vmin.xlane.f32.xlu0 %v487_v45  ;;  %v492_v6 = vshll.u32 %v491_v62, 16 }
 0x4dd   :  { %v513_v48 = vpop.xlane.xlu1 %512  ;;  %v475_v57 = vpop.xlane.xlu0 %474 }
 0x4de   :  { %vm514_vm10 = vcmp.eq.f32.partialorder %v511_v18, %v513_v48  ;;  %v476_v60 = vcvt.f32.s32 %v475_v57  ;;  %v519_v0 = vcvt.f32.s32 %v513_v48 }
 0x4df   :  { %v515_v50 = vsel %vm514_vm10, %v510_v47, inf }
 0x4e0   :  { %516 = vmin.xlane.f32.xlu1 %v515_v50  ;;  %v479_v9 = vadd.s32 %v478_v58, %v476_v60  ;;  %v520_v14 = vshll.u32 %v519_v0, 16 }
 0x4e1   :  { %v503_v10 = vpop.xlane.xlu1 %502 }
 0x4e2   :  { %vm522_vm11 = vcmp.eq.s32.totalorder %v4079_v1, %v479_v9  ;;  %v504_v4 = vcvt.f32.s32 %v503_v10 }
 0x4e3   :  { %2884 = vmatprep.mubr.msk.f32.mxu0 %vm522_vm11, %v4029_v51  ;;  %v4327_v2 = vsel %vm522_vm11, inf, %v4255_v53 }
 0x4e4   :  { %v507_v3 = vadd.s32 %v506_v11, %v504_v4  ;;  %726 = vmin.xlane.f32.xlu0 %v4327_v2 }
 0x4e6   :  { %vm524_vm12 = vcmp.eq.s32.totalorder %v4079_v1, %v507_v3 }
 0x4e7   :  { %2919 = vmatprep.mubr.msk.f32.mxu1 %vm524_vm12, %v4029_v51  ;;  %v4334_v16 = vsel %vm524_vm12, inf, %v4263_v61 }
 0x4e8   :  { %730 = vmin.xlane.f32.xlu1 %v4334_v16 }
 0x569   :  { %v489_v7 = vpop.xlane.xlu0 %488 }
 0x56a   :  { %v490_v12 = vcvt.f32.s32 %v489_v7 }
 0x56c   :  { %v493_v5 = vadd.s32 %v492_v6, %v490_v12 }
 0x56d   :  { %v517_v13 = vpop.xlane.xlu1 %516 }
 0x56e   :  { %v518_v15 = vcvt.f32.s32 %v517_v13  ;;  %vm523_vm13 = vcmp.eq.s32.totalorder %v4079_v1, %v493_v5 }
 0x56f   :  { %2885 = vmatmul.mubr.msk.f32.vlgmr.msra.gmra.mrb[2].mxu0 %vm523_vm13, %v4029_v51  ;;  %v4339_v53 = vsel %vm523_vm13, inf, %v4266_v8 }
 0x570   :  { %v521_v18 = vadd.s32 %v520_v14, %v518_v15  ;;  %728 = vmin.xlane.f32.xlu0 %v4339_v53  ;;  %3473 = vmatpush3.bf16.msra.mxu0 %v4178_v27 }
 0x571   :  { %3475 = vmatprep.subr.bf16.mxu0 %v4180_v31  ;;  %v727_v27 = vpop.xlane.xlu0 %726 }
 0x572   :  { %vm525_vm14 = vcmp.eq.s32.totalorder %v4079_v1, %v521_v18  ;;  %vm734_vm15 = vcmp.le.f32.partialorder %v4327_v2, %v727_v27 }
 0x573   :  { %2920 = vmatmul.mubr.msk.f32.vlgmr.msra.gmra.mrb[2].mxu1 %vm525_vm14, %v4029_v51  ;;  %v4347_v61 = vsel %vm525_vm14, inf, %v4275_v63 }
 0x574   :  { %732 = vmin.xlane.f32.xlu1 %v4347_v61  ;;  %3505 = vmatpush3.bf16.msra.mxu1 %v4182_v32 }
 0x575   :  { %3477 = vmatpush3.bf16.msra.mxu0 %v4180_v31  ;;  %3507 = vmatprep.subr.bf16.mxu1 %v4187_v37  ;;  %v738_v31 = vsel %vm734_vm15, %v4079_v1, 128 }
 0x576   :  { %3479 = vmatprep.subr.bf16.mxu0 %v4191_v40  ;;  %v743_v32 = vshra.s32 %v738_v31, 16  ;;  %v742_v22 = vand.u32 65535, %v738_v31 }
 0x578   :  { %3509 = vmatpush3.bf16.msra.mxu1 %v4187_v37  ;;  %v731_v37 = vpop.xlane.xlu1 %730  ;;  %v744_v24 = vcvt.s32.f32 %v742_v22  ;;  %v1181_v22 = vld [vmem:[#allocation6 + $0x88] sm:$0xff] }
 0x579   :  { %3481 = vmatpush3.bf16.msra.mxu0 %v4191_v40  ;;  %3511 = vmatprep.subr.bf16.mxu1 %v4194_v43  ;;  %vm736_vm0 = vcmp.le.f32.partialorder %v4334_v16, %v731_v37 }
 0x57a   :  { %3483 = vmatprep.subr.bf16.mxu0 %v4199_v46 }
 0x57c   :  { %3513 = vmatpush3.bf16.msra.mxu1 %v4194_v43  ;;  %v745_v43 = vcvt.s32.f32 %v743_v32 }
 0x57d   :  { %3485 = vmatpush3.bf16.msra.mxu0 %v4199_v46  ;;  %3515 = vmatprep.subr.bf16.mxu1 %v4202_v49  ;;  %v740_v46 = vsel %vm736_vm0, %v4079_v1, 128 }
 0x57e   :  { %3487 = vmatprep.subr.bf16.mxu0 %v4207_v52  ;;  %746 = vmin.xlane.f32.xlu0 %v745_v43  ;;  %v770_v26 = vand.u32 65535, %v740_v46 }
 0x580   :  { %3517 = vmatpush3.bf16.msra.mxu1 %v4202_v49  ;;  %v771_v49 = vshra.s32 %v740_v46, 16  ;;  %v772_v34 = vcvt.s32.f32 %v770_v26 }
 0x581   :  { %3489 = vmatpush3.bf16.msra.mxu0 %v4207_v52  ;;  %3519 = vmatprep.subr.bf16.mxu1 %v4210_v55 }
 0x582   :  { %3491 = vmatprep.subr.bf16.mxu0 %v4215_v56 }
 0x584   :  { %3521 = vmatpush3.bf16.msra.mxu1 %v4210_v55 }
 0x585   :  { %3493 = vmatpush3.bf16.msra.mxu0 %v4215_v56  ;;  %3523 = vmatprep.subr.bf16.mxu1 %v4232_v19 }
 0x586   :  { %3495 = vmatprep.subr.bf16.mxu0 %v4230_v17 }
 0x588   :  { %3525 = vmatpush3.bf16.msra.mxu1 %v4232_v19 }
 0x589   :  { %3497 = vmatpush3.bf16.msra.mxu0 %v4230_v17  ;;  %3527 = vmatprep.subr.bf16.mxu1 %v4240_v25  ;;  %v773_v17 = vcvt.s32.f32 %v771_v49 }
 0x58a   :  { %3499 = vmatprep.subr.bf16.mxu0 %v4238_v23 }
 0x58b   :  { %774 = vmin.xlane.f32.xlu1 %v773_v17 }
 0x58c   :  { %3529 = vmatpush3.bf16.msra.mxu1 %v4240_v25 }
 0x58d   :  { %3501 = vmatpush3.bf16.msra.mxu0 %v4238_v23  ;;  %3531 = vmatprep.subr.bf16.mxu1 %v4246_v29 }
 0x590   :  { %3533 = vmatpush3.bf16.msra.mxu1 %v4246_v29 }
 0x5fd   :  { %v729_v40 = vpop.xlane.xlu0 %728 }
 0x5fe   :  { %vm735_vm1 = vcmp.le.f32.partialorder %v4339_v53, %v729_v40 }
 0x5ff   :  { %v739_v52 = vsel %vm735_vm1, %v4079_v1, 128 }
 0x600   :  { %v757_v55 = vshra.s32 %v739_v52, 16  ;;  %v756_v30 = vand.u32 65535, %v739_v52 }
 0x601   :  { %v733_v56 = vpop.xlane.xlu1 %732 }
 0x602   :  { %vm737_vm2 = vcmp.le.f32.partialorder %v4347_v61, %v733_v56  ;;  %v759_v23 = vcvt.s32.f32 %v757_v55  ;;  %v758_v38 = vcvt.s32.f32 %v756_v30  ;;  %v1091_v30 = vld [vmem:[#allocation6 + $0x28] sm:$0xff] }
 0x603   :  { %v741_v19 = vsel %vm737_vm2, %v4079_v1, 128 }
 0x604   :  { %v785_v25 = vshra.s32 %v741_v19, 16  ;;  %760 = vmin.xlane.f32.xlu0 %v759_v23  ;;  %v784_v35 = vand.u32 65535, %v741_v19 }
 0x606   :  { %v787_v29 = vcvt.s32.f32 %v785_v25  ;;  %v786_v44 = vcvt.s32.f32 %v784_v35  ;;  %v1086_v25 = vld [vmem:[#allocation6] sm:$0xff] }
 0x608   :  { %788 = vmin.xlane.f32.xlu1 %v787_v29 }
 0x60b   :  { %v747_v28 = vpop.xlane.xlu0 %746 }
 0x60c   :  { %vm748_vm3 = vcmp.eq.f32.partialorder %v745_v43, %v747_v28  ;;  %v753_v48 = vcvt.f32.s32 %v747_v28  ;;  %v1090_v28 = vld [vmem:[#allocation6 + $0x20] sm:$0xff] }
 0x60d   :  { %v749_v33 = vsel %vm748_vm3, %v744_v24, inf }
 0x60e   :  { %750 = vmin.xlane.f32.xlu0 %v749_v33  ;;  %v754_v54 = vshll.u32 %v753_v48, 16  ;;  %v1182_v33 = vld [vmem:[#allocation6 + $0x90] sm:$0xff] }
 0x618   :  { %v775_v36 = vpop.xlane.xlu1 %774 }
 0x619   :  { %vm776_vm4 = vcmp.eq.f32.partialorder %v773_v17, %v775_v36  ;;  %v781_v57 = vcvt.f32.s32 %v775_v36  ;;  %v1184_v36 = vld [vmem:[#allocation6 + $0xa0] sm:$0xff] }
 0x61a   :  { %v777_v41 = vsel %vm776_vm4, %v772_v34, inf  ;;  %v1183_v34 = vld [vmem:[#allocation6 + $0x98] sm:$0xff] }
 0x61b   :  { %778 = vmin.xlane.f32.xlu1 %v777_v41  ;;  %v782_v9 = vshll.u32 %v781_v57, 16  ;;  %v4455_v35 = vpack.c.bf16 %v1183_v34, %v1182_v33  ;;  %v1092_v41 = vld [vmem:[#allocation6 + $0x30] sm:$0xff]  ;;  %v1195_v33 = vld [vmem:[#allocation6 + $0xf8] sm:$0xff] }
 0x642   :  { %v2886_v8 = vpop.f32.mrb[2].mxu0 }
 0x643   :  { %627 = vst.msk [vmem:[#allocation9 + $0x18] sm:$0xff] %vm343_vm6, %v2886_v8  ;;  %v616_v63 = vpop.f32.mrb[3].mxu0  ;;  %v1088_v8 = vld [vmem:[#allocation6 + $0x10] sm:$0xff] }
 0x644   :  { %626 = vst.msk [vmem:[#allocation9 + $0x10] sm:$0xff] %vm343_vm6, %v616_v63 }
 0x646   :  { %v2921_v20 = vpop.f32.mrb[2].mxu1 }
 0x647   :  { %721 = vst.msk [vmem:[#allocation9 + $0x98] sm:$0xff] %vm343_vm6, %v2921_v20  ;;  %v710_v21 = vpop.f32.mrb[3].mxu1  ;;  %v1089_v20 = vld [vmem:[#allocation6 + $0x18] sm:$0xff] }
 0x648   :  { %720 = vst.msk [vmem:[#allocation9 + $0x90] sm:$0xff] %vm343_vm6, %v710_v21  ;;  %v1180_v21 = vld [vmem:[#allocation6 + $0x80] sm:$0xff]  ;;  %v4448_v24 = vpack.c.bf16 %v1089_v20, %v1088_v8  ;;  %v1191_v8 = vld [vmem:[#allocation6 + $0xd8] sm:$0xff] }
 0x649   :  { %v4450_v26 = vpack.c.bf16 %v1181_v22, %v1180_v21  ;;  %v1192_v21 = vld [vmem:[#allocation6 + $0xe0] sm:$0xff]  ;;  %v1193_v22 = vld [vmem:[#allocation6 + $0xe8] sm:$0xff] }
 0x64b   :  { %3567 = vmatprep.subr.bf16.mxu1 %v4450_v26 }
 0x691   :  { %v761_v39 = vpop.xlane.xlu0 %760 }
 0x692   :  { %vm762_vm5 = vcmp.eq.f32.partialorder %v759_v23, %v761_v39  ;;  %v767_v59 = vcvt.f32.s32 %v761_v39  ;;  %v4459_v39 = vpack.c.bf16 %v1091_v30, %v1090_v28  ;;  %v4512_v28 = vpack.c.bf16 %v1193_v22, %v1192_v21  ;;  %v1194_v30 = vld [vmem:[#allocation6 + $0xf0] sm:$0xff] }
 0x693   :  { %v763_v42 = vsel %vm762_vm5, %v758_v38, inf  ;;  %v1185_v38 = vld [vmem:[#allocation6 + $0xa8] sm:$0xff]  ;;  %v4518_v34 = vpack.c.bf16 %v1195_v33, %v1194_v30 }
 0x694   :  { %764 = vmin.xlane.f32.xlu0 %v763_v42  ;;  %v768_v4 = vshll.u32 %v767_v59, 16  ;;  %v1093_v42 = vld [vmem:[#allocation6 + $0x38] sm:$0xff]  ;;  %v1189_v59 = vld [vmem:[#allocation6 + $0xc8] sm:$0xff] }
 0x695   :  { %v789_v45 = vpop.xlane.xlu1 %788  ;;  %v4467_v48 = vpack.c.bf16 %v1093_v42, %v1092_v41 }
 0x696   :  { %vm790_vm7 = vcmp.eq.f32.partialorder %v787_v29, %v789_v45  ;;  %v795_v10 = vcvt.f32.s32 %v789_v45  ;;  %v1087_v29 = vld [vmem:[#allocation6 + $0x8] sm:$0xff]  ;;  %v1186_v45 = vld [vmem:[#allocation6 + $0xb0] sm:$0xff] }
 0x697   :  { %v791_v47 = vsel %vm790_vm7, %v786_v44, inf  ;;  %v4446_v63 = vpack.c.bf16 %v1087_v29, %v1086_v25  ;;  %v4462_v44 = vpack.c.bf16 %v1185_v38, %v1184_v36  ;;  %v1099_v25 = vld [vmem:[#allocation6 + $0x68] sm:$0xff] }
 0x698   :  { %792 = vmin.xlane.f32.xlu1 %v791_v47  ;;  %v796_v13 = vshll.u32 %v795_v10, 16  ;;  %v1187_v47 = vld [vmem:[#allocation6 + $0xb8] sm:$0xff] }
 0x699   :  { %3535 = vmatprep.subr.bf16.mxu0 %v4446_v63  ;;  %v4470_v57 = vpack.c.bf16 %v1187_v47, %v1186_v45 }
 0x69b   :  { %v751_v50 = vpop.xlane.xlu0 %750 }
 0x69c   :  { %v752_v58 = vcvt.f32.s32 %v751_v50  ;;  %v1094_v50 = vld [vmem:[#allocation6 + $0x40] sm:$0xff] }
 0x69e   :  { %v755_v60 = vadd.s32 %v754_v54, %v752_v58  ;;  %v1095_v54 = vld [vmem:[#allocation6 + $0x48] sm:$0xff]  ;;  %v1188_v58 = vld [vmem:[#allocation6 + $0xc0] sm:$0xff] }
 0x69f   :  { %v4478_v10 = vpack.c.bf16 %v1189_v59, %v1188_v58 }
 0x6a0   :  { %vm798_vm8 = vcmp.eq.s32.totalorder %v4079_v1, %v755_v60  ;;  %v4475_v60 = vpack.c.bf16 %v1095_v54, %v1094_v50 }
 0x6a1   :  { %2954 = vmatprep.mubr.msk.f32.mxu0 %vm798_vm8, %v4029_v51  ;;  %v4393_v6 = vsel %vm798_vm8, inf, %v4327_v2 }
 0x6a2   :  { %1002 = vmin.xlane.f32.xlu0 %v4393_v6 }
 0x6a8   :  { %v779_v62 = vpop.xlane.xlu1 %778 }
 0x6a9   :  { %v780_v11 = vcvt.f32.s32 %v779_v62  ;;  %v1096_v62 = vld [vmem:[#allocation6 + $0x50] sm:$0xff] }
 0x6ab   :  { %v783_v12 = vadd.s32 %v782_v9, %v780_v11  ;;  %v1097_v9 = vld [vmem:[#allocation6 + $0x58] sm:$0xff] }
 0x6ac   :  { %v4483_v11 = vpack.c.bf16 %v1097_v9, %v1096_v62 }
 0x6ad   :  { %vm800_vm9 = vcmp.eq.s32.totalorder %v4079_v1, %v783_v12 }
 0x6ae   :  { %2989 = vmatprep.mubr.msk.f32.mxu1 %vm800_vm9, %v4029_v51  ;;  %v4400_v15 = vsel %vm800_vm9, inf, %v4334_v16 }
 0x6af   :  { %1006 = vmin.xlane.f32.xlu1 %v4400_v15 }
 0x721   :  { %v765_v0 = vpop.xlane.xlu0 %764 }
 0x722   :  { %v766_v7 = vcvt.f32.s32 %v765_v0 }
 0x724   :  { %v769_v3 = vadd.s32 %v768_v4, %v766_v7 }
 0x725   :  { %v793_v5 = vpop.xlane.xlu1 %792 }
 0x726   :  { %v794_v14 = vcvt.f32.s32 %v793_v5  ;;  %vm799_vm10 = vcmp.eq.s32.totalorder %v4079_v1, %v769_v3 }
 0x727   :  { %2955 = vmatmul.mubr.msk.f32.vlgmr.msra.gmra.mrb[4].mxu0 %vm799_vm10, %v4029_v51  ;;  %v4405_v2 = vsel %vm799_vm10, inf, %v4339_v53 }
 0x728   :  { %v797_v18 = vadd.s32 %v796_v13, %v794_v14  ;;  %1004 = vmin.xlane.f32.xlu0 %v4405_v2  ;;  %3537 = vmatpush3.bf16.msra.mxu0 %v4446_v63 }
 0x729   :  { %3539 = vmatprep.subr.bf16.mxu0 %v4448_v24 }
 0x72a   :  { %vm801_vm11 = vcmp.eq.s32.totalorder %v4079_v1, %v797_v18 }
 0x72b   :  { %2990 = vmatmul.mubr.msk.f32.vlgmr.msra.gmra.mrb[4].mxu1 %vm801_vm11, %v4029_v51  ;;  %v4411_v27 = vsel %vm801_vm11, inf, %v4347_v61 }
 0x72c   :  { %1008 = vmin.xlane.f32.xlu1 %v4411_v27  ;;  %3569 = vmatpush3.bf16.msra.mxu1 %v4450_v26 }
 0x72d   :  { %3571 = vmatprep.subr.bf16.mxu1 %v4455_v35  ;;  %3541 = vmatpush3.bf16.msra.mxu0 %v4448_v24 }
 0x72e   :  { %3543 = vmatprep.subr.bf16.mxu0 %v4459_v39 }
 0x72f   :  { %v1003_v16 = vpop.xlane.xlu0 %1002 }
 0x730   :  { %vm1010_vm12 = vcmp.le.f32.partialorder %v4393_v6, %v1003_v16  ;;  %3573 = vmatpush3.bf16.msra.mxu1 %v4455_v35 }
 0x731   :  { %v4416_v31 = vsel %vm1010_vm12, %v4079_v1, 128  ;;  %3575 = vmatprep.subr.bf16.mxu1 %v4462_v44  ;;  %3545 = vmatpush3.bf16.msra.mxu0 %v4459_v39 }
 0x732   :  { %v1019_v53 = vshra.s32 %v4416_v31, 16  ;;  %3547 = vmatprep.subr.bf16.mxu0 %v4467_v48  ;;  %v1018_v3 = vand.u32 65535, %v4416_v31 }
 0x734   :  { %v4420_v40 = vcvt.s32.f32 %v1019_v53  ;;  %3577 = vmatpush3.bf16.msra.mxu1 %v4462_v44  ;;  %v1020_v5 = vcvt.s32.f32 %v1018_v3 }
 0x735   :  { %3579 = vmatprep.subr.bf16.mxu1 %v4470_v57  ;;  %3549 = vmatpush3.bf16.msra.mxu0 %v4467_v48 }
 0x736   :  { %1022 = vmin.xlane.f32.xlu0 %v4420_v40  ;;  %3551 = vmatprep.subr.bf16.mxu0 %v4475_v60 }
 0x738   :  { %3581 = vmatpush3.bf16.msra.mxu1 %v4470_v57 }
 0x739   :  { %3583 = vmatprep.subr.bf16.mxu1 %v4478_v10  ;;  %3553 = vmatpush3.bf16.msra.mxu0 %v4475_v60 }
 0x73a   :  { %3555 = vmatprep.subr.bf16.mxu0 %v4483_v11 }
 0x73c   :  { %v1007_v32 = vpop.xlane.xlu1 %1006  ;;  %3585 = vmatpush3.bf16.msra.mxu1 %v4478_v10 }
 0x73d   :  { %vm1012_vm13 = vcmp.le.f32.partialorder %v4400_v15, %v1007_v32  ;;  %3557 = vmatpush3.bf16.msra.mxu0 %v4483_v11 }
 0x73e   :  { %v4423_v43 = vsel %vm1012_vm13, %v4079_v1, 128 }
 0x73f   :  { %v1047_v61 = vshra.s32 %v4423_v43, 16  ;;  %v1046_v13 = vand.u32 65535, %v4423_v43 }
 0x741   :  { %v4433_v55 = vcvt.s32.f32 %v1047_v61  ;;  %v1048_v53 = vcvt.s32.f32 %v1046_v13 }
 0x743   :  { %1050 = vmin.xlane.f32.xlu1 %v4433_v55 }
 0x7b5   :  { %v1005_v37 = vpop.xlane.xlu0 %1004 }
 0x7b6   :  { %vm1011_vm14 = vcmp.le.f32.partialorder %v4405_v2, %v1005_v37 }
 0x7b7   :  { %v4428_v46 = vsel %vm1011_vm14, %v4079_v1, 128 }
 0x7b8   :  { %v1033_v49 = vshra.s32 %v4428_v46, 16  ;;  %v1032_v18 = vand.u32 65535, %v4428_v46 }
 0x7b9   :  { %v1009_v52 = vpop.xlane.xlu1 %1008 }
 0x7ba   :  { %vm1013_vm15 = vcmp.le.f32.partialorder %v4411_v27, %v1009_v52  ;;  %v4438_v17 = vcvt.s32.f32 %v1033_v49  ;;  %v1034_v61 = vcvt.s32.f32 %v1032_v18 }
 0x7bb   :  { %v4436_v56 = vsel %vm1013_vm15, %v4079_v1, 128 }
 0x7bc   :  { %v1061_v19 = vshra.s32 %v4436_v56, 16  ;;  %1036 = vmin.xlane.f32.xlu0 %v4438_v17  ;;  %v1060_v32 = vand.u32 65535, %v4436_v56  ;;  %v1190_v56 = vld [vmem:[#allocation6 + $0xd0] sm:$0xff] }
 0x7bd   :  { %v4504_v20 = vpack.c.bf16 %v1191_v8, %v1190_v56 }
 0x7be   :  { %v4443_v23 = vcvt.s32.f32 %v1061_v19  ;;  %v1062_v43 = vcvt.s32.f32 %v1060_v32  ;;  %v1098_v19 = vld [vmem:[#allocation6 + $0x60] sm:$0xff] }
 0x7bf   :  { %v4502_v29 = vpack.c.bf16 %v1099_v25, %v1098_v19  ;;  %3587 = vmatprep.subr.bf16.mxu1 %v4504_v20 }
 0x7c0   :  { %1064 = vmin.xlane.f32.xlu1 %v4443_v23  ;;  %3589 = vmatpush3.bf16.msra.mxu1 %v4504_v20 }
 0x7c1   :  { %3559 = vmatprep.subr.bf16.mxu0 %v4502_v29  ;;  %3591 = vmatprep.subr.bf16.mxu1 %v4512_v28 }
 0x7c2   :  { %3561 = vmatpush3.bf16.msra.mxu0 %v4502_v29 }
 0x7c3   :  { %v1023_v14 = vpop.xlane.xlu0 %1022 }
 0x7c4   :  { %vm1024_vm0 = vcmp.eq.f32.partialorder %v4420_v40, %v1023_v14  ;;  %3593 = vmatpush3.bf16.msra.mxu1 %v4512_v28  ;;  %v1029_v36 = vcvt.f32.s32 %v1023_v14 }
 0x7c5   :  { %v1025_v16 = vsel %vm1024_vm0, %v1020_v5, inf  ;;  %3595 = vmatprep.subr.bf16.mxu1 %v4518_v34 }
 0x7c6   :  { %1026 = vmin.xlane.f32.xlu0 %v1025_v16  ;;  %v1030_v41 = vshll.u32 %v1029_v36, 16 }
 0x7c8   :  { %3597 = vmatpush3.bf16.msra.mxu1 %v4518_v34 }
 0x7c9   :  { %3631 = vmatprep.subr.bf16.mxu1 %v4450_v26 }
 0x7d0   :  { %v1051_v37 = vpop.xlane.xlu1 %1050 }
 0x7d1   :  { %vm1052_vm1 = vcmp.eq.f32.partialorder %v4433_v55, %v1051_v37  ;;  %v1100_v55 = vld [vmem:[#allocation6 + $0x70] sm:$0xff]  ;;  %v1057_v42 = vcvt.f32.s32 %v1051_v37 }
 0x7d2   :  { %v1053_v52 = vsel %vm1052_vm1, %v1048_v53, inf }
 0x7d3   :  { %1054 = vmin.xlane.f32.xlu1 %v1053_v52  ;;  %v1058_v58 = vshll.u32 %v1057_v42, 16 }
 0x7fa   :  { %v2956_v0 = vpop.f32.mrb[4].mxu0 }
 0x7fb   :  { %903 = vst.msk [vmem:[#allocation9 + $0x28] sm:$0xff] %vm343_vm6, %v2956_v0  ;;  %v892_v4 = vpop.f32.mrb[5].mxu0 }
 0x7fc   :  { %902 = vst.msk [vmem:[#allocation9 + $0x20] sm:$0xff] %vm343_vm6, %v892_v4 }
 0x7fe   :  { %v2991_v7 = vpop.f32.mrb[4].mxu1 }
 0x7ff   :  { %997 = vst.msk [vmem:[#allocation9 + $0xa8] sm:$0xff] %vm343_vm6, %v2991_v7  ;;  %v986_v12 = vpop.f32.mrb[5].mxu1 }
 0x800   :  { %996 = vst.msk [vmem:[#allocation9 + $0xa0] sm:$0xff] %vm343_vm6, %v986_v12 }
 0x849   :  { %v1037_v49 = vpop.xlane.xlu0 %1036 }
 0x84a   :  { %vm1038_vm2 = vcmp.eq.f32.partialorder %v4438_v17, %v1037_v49  ;;  %v1101_v17 = vld [vmem:[#allocation6 + $0x78] sm:$0xff]  ;;  %v1043_v47 = vcvt.f32.s32 %v1037_v49 }
 0x84b   :  { %v1039_v31 = vsel %vm1038_vm2, %v1034_v61, inf }
 0x84c   :  { %1040 = vmin.xlane.f32.xlu0 %v1039_v31  ;;  %v1044_v0 = vshll.u32 %v1043_v47, 16 }
 0x84d   :  { %v1065_v46 = vpop.xlane.xlu1 %1064 }
 0x84e   :  { %vm1066_vm3 = vcmp.eq.f32.partialorder %v4443_v23, %v1065_v46  ;;  %v4510_v23 = vpack.c.bf16 %v1101_v17, %v1100_v55  ;;  %v1071_v59 = vcvt.f32.s32 %v1065_v46 }
 0x84f   :  { %v1067_v40 = vsel %vm1066_vm3, %v1062_v43, inf }
 0x850   :  { %1068 = vmin.xlane.f32.xlu1 %v1067_v40  ;;  %3563 = vmatprep.subr.bf16.mxu0 %v4510_v23  ;;  %v1072_v13 = vshll.u32 %v1071_v59, 16 }
 0x851   :  { %3565 = vmatpush3.bf16.msra.mxu0 %v4510_v23 }
 0x852   :  { %3599 = vmatprep.subr.bf16.mxu0 %v4446_v63 }
 0x853   :  { %v1027_v38 = vpop.xlane.xlu0 %1026 }
 0x854   :  { %v1028_v45 = vcvt.f32.s32 %v1027_v38 }
 0x856   :  { %v1031_v50 = vadd.s32 %v1030_v41, %v1028_v45 }
 0x858   :  { %vm1074_vm4 = vcmp.eq.s32.totalorder %v4079_v1, %v1031_v50 }
 0x859   :  { %3024 = vmatprep.mubr.msk.f32.mxu0 %vm1074_vm4, %v4029_v51  ;;  %v4527_v7 = vsel %vm1074_vm4, inf, %v4393_v6 }
 0x85a   :  { %1278 = vmin.xlane.f32.xlu0 %v4527_v7 }
 0x860   :  { %v1055_v54 = vpop.xlane.xlu1 %1054 }
 0x861   :  { %v1056_v62 = vcvt.f32.s32 %v1055_v54 }
 0x863   :  { %v1059_v12 = vadd.s32 %v1058_v58, %v1056_v62 }
 0x865   :  { %vm1076_vm5 = vcmp.eq.s32.totalorder %v4079_v1, %v1059_v12 }
 0x866   :  { %3059 = vmatprep.mubr.msk.f32.mxu1 %vm1076_vm5, %v4029_v51  ;;  %v4534_v18 = vsel %vm1076_vm5, inf, %v4400_v15 }
 0x867   :  { %1282 = vmin.xlane.f32.xlu1 %v4534_v18 }
 0x8d9   :  { %v1041_v9 = vpop.xlane.xlu0 %1040 }
 0x8da   :  { %v1042_v4 = vcvt.f32.s32 %v1041_v9 }
 0x8dc   :  { %v1045_v3 = vadd.s32 %v1044_v0, %v1042_v4 }
 0x8dd   :  { %v1069_v5 = vpop.xlane.xlu1 %1068 }
 0x8de   :  { %v1070_v14 = vcvt.f32.s32 %v1069_v5  ;;  %vm1075_vm7 = vcmp.eq.s32.totalorder %v4079_v1, %v1045_v3 }
 0x8df   :  { %3025 = vmatmul.mubr.msk.f32.vlgmr.msra.gmra.mrb[6].mxu0 %vm1075_vm7, %v4029_v51  ;;  %v4539_v6 = vsel %vm1075_vm7, inf, %v4405_v2 }
 0x8e0   :  { %v1073_v16 = vadd.s32 %v1072_v13, %v1070_v14  ;;  %1280 = vmin.xlane.f32.xlu0 %v4539_v6  ;;  %3601 = vmatpush3.bf16.msra.mxu0 %v4446_v63 }
 0x8e1   :  { %3603 = vmatprep.subr.bf16.mxu0 %v4448_v24 }
 0x8e2   :  { %vm1077_vm8 = vcmp.eq.s32.totalorder %v4079_v1, %v1073_v16 }
 0x8e3   :  { %3060 = vmatmul.mubr.msk.f32.vlgmr.msra.gmra.mrb[6].mxu1 %vm1077_vm8, %v4029_v51  ;;  %v4547_v15 = vsel %vm1077_vm8, inf, %v4411_v27 }
 0x8e4   :  { %1284 = vmin.xlane.f32.xlu1 %v4547_v15  ;;  %3633 = vmatpush3.bf16.msra.mxu1 %v4450_v26 }
 0x8e5   :  { %3605 = vmatpush3.bf16.msra.mxu0 %v4448_v24  ;;  %3635 = vmatprep.subr.bf16.mxu1 %v4455_v35 }
 0x8e6   :  { %3607 = vmatprep.subr.bf16.mxu0 %v4459_v39 }
 0x8e7   :  { %v1279_v2 = vpop.xlane.xlu0 %1278 }
 0x8e8   :  { %3637 = vmatpush3.bf16.msra.mxu1 %v4455_v35  ;;  %vm1286_vm9 = vcmp.le.f32.partialorder %v4527_v7, %v1279_v2 }
 0x8e9   :  { %3609 = vmatpush3.bf16.msra.mxu0 %v4459_v39  ;;  %3639 = vmatprep.subr.bf16.mxu1 %v4462_v44  ;;  %v1290_v27 = vsel %vm1286_vm9, %v4079_v1, 128 }
 0x8ea   :  { %3611 = vmatprep.subr.bf16.mxu0 %v4467_v48  ;;  %v1295_v53 = vshra.s32 %v1290_v27, 16  ;;  %v1294_v30 = vand.u32 65535, %v1290_v27 }
 0x8ec   :  { %3641 = vmatpush3.bf16.msra.mxu1 %v4462_v44  ;;  %v1297_v61 = vcvt.s32.f32 %v1295_v53  ;;  %v1296_v33 = vcvt.s32.f32 %v1294_v30 }
 0x8ed   :  { %3613 = vmatpush3.bf16.msra.mxu0 %v4467_v48  ;;  %3643 = vmatprep.subr.bf16.mxu1 %v4470_v57 }
 0x8ee   :  { %3615 = vmatprep.subr.bf16.mxu0 %v4475_v60  ;;  %1298 = vmin.xlane.f32.xlu0 %v1297_v61 }
 0x8f0   :  { %3645 = vmatpush3.bf16.msra.mxu1 %v4470_v57 }
 0x8f1   :  { %3617 = vmatpush3.bf16.msra.mxu0 %v4475_v60  ;;  %3647 = vmatprep.subr.bf16.mxu1 %v4478_v10 }
 0x8f2   :  { %3619 = vmatprep.subr.bf16.mxu0 %v4483_v11 }
 0x8f4   :  { %3649 = vmatpush3.bf16.msra.mxu1 %v4478_v10  ;;  %v1283_v32 = vpop.xlane.xlu1 %1282 }
 0x8f5   :  { %3621 = vmatpush3.bf16.msra.mxu0 %v4483_v11  ;;  %3651 = vmatprep.subr.bf16.mxu1 %v4504_v20  ;;  %vm1288_vm10 = vcmp.le.f32.partialorder %v4534_v18, %v1283_v32 }
 0x8f6   :  { %3623 = vmatprep.subr.bf16.mxu0 %v4502_v29  ;;  %v1292_v49 = vsel %vm1288_vm10, %v4079_v1, 128 }
 0x8f7   :  { %v1323_v52 = vshra.s32 %v1292_v49, 16  ;;  %v1322_v36 = vand.u32 65535, %v1292_v49 }
 0x8f8   :  { %3653 = vmatpush3.bf16.msra.mxu1 %v4504_v20 }
 0x8f9   :  { %3625 = vmatpush3.bf16.msra.mxu0 %v4502_v29  ;;  %3655 = vmatprep.subr.bf16.mxu1 %v4512_v28  ;;  %v1325_v40 = vcvt.s32.f32 %v1323_v52  ;;  %v1324_v45 = vcvt.s32.f32 %v1322_v36 }
 0x8fa   :  { %3627 = vmatprep.subr.bf16.mxu0 %v4510_v23 }
 0x8fb   :  { %1326 = vmin.xlane.f32.xlu1 %v1325_v40 }
 0x8fc   :  { %3657 = vmatpush3.bf16.msra.mxu1 %v4512_v28 }
 0x8fd   :  { %3629 = vmatpush3.bf16.msra.mxu0 %v4510_v23  ;;  %3659 = vmatprep.subr.bf16.mxu1 %v4518_v34 }
 0x8fe   :  { %3663 = vmatprep.subr.bf16.mxu0 %v4446_v63 }
 0x900   :  { %3661 = vmatpush3.bf16.msra.mxu1 %v4518_v34 }
 0x901   :  { %3695 = vmatprep.subr.bf16.mxu1 %v4450_v26 }
 0x96d   :  { %v1281_v37 = vpop.xlane.xlu0 %1280 }
 0x96e   :  { %vm1287_vm11 = vcmp.le.f32.partialorder %v4539_v6, %v1281_v37 }
 0x96f   :  { %v1291_v31 = vsel %vm1287_vm11, %v4079_v1, 128 }
 0x970   :  { %v1309_v43 = vshra.s32 %v1291_v31, 16  ;;  %v1308_v41 = vand.u32 65535, %v1291_v31 }
 0x971   :  { %v1285_v46 = vpop.xlane.xlu1 %1284 }
 0x972   :  { %vm1289_vm12 = vcmp.le.f32.partialorder %v4547_v15, %v1285_v46  ;;  %v1311_v25 = vcvt.s32.f32 %v1309_v43  ;;  %v1310_v54 = vcvt.s32.f32 %v1308_v41 }
 0x973   :  { %v1293_v19 = vsel %vm1289_vm12, %v4079_v1, 128 }
 0x974   :  { %v1337_v56 = vshra.s32 %v1293_v19, 16  ;;  %1312 = vmin.xlane.f32.xlu0 %v1311_v25  ;;  %v1336_v47 = vand.u32 65535, %v1293_v19 }
 0x976   :  { %v1339_v8 = vcvt.s32.f32 %v1337_v56  ;;  %v1338_v9 = vcvt.s32.f32 %v1336_v47 }
 0x978   :  { %1340 = vmin.xlane.f32.xlu1 %v1339_v8 }
 0x97b   :  { %v1299_v38 = vpop.xlane.xlu0 %1298 }
 0x97c   :  { %vm1300_vm13 = vcmp.eq.f32.partialorder %v1297_v61, %v1299_v38  ;;  %v1305_v12 = vcvt.f32.s32 %v1299_v38 }
 0x97d   :  { %v1301_v42 = vsel %vm1300_vm13, %v1296_v33, inf }
 0x97e   :  { %1302 = vmin.xlane.f32.xlu0 %v1301_v42  ;;  %v1306_v5 = vshll.u32 %v1305_v12, 16 }
 0x988   :  { %v1327_v50 = vpop.xlane.xlu1 %1326 }
 0x989   :  { %vm1328_vm14 = vcmp.eq.f32.partialorder %v1325_v40, %v1327_v50  ;;  %v1333_v13 = vcvt.f32.s32 %v1327_v50 }
 0x98a   :  { %v1329_v59 = vsel %vm1328_vm14, %v1324_v45, inf }
 0x98b   :  { %1330 = vmin.xlane.f32.xlu1 %v1329_v59  ;;  %v1334_v53 = vshll.u32 %v1333_v13, 16 }
 0x9b2   :  { %v3026_v55 = vpop.f32.mrb[6].mxu0 }
 0x9b3   :  { %1179 = vst.msk [vmem:[#allocation9 + $0x38] sm:$0xff] %vm343_vm6, %v3026_v55  ;;  %v1168_v17 = vpop.f32.mrb[7].mxu0 }
 0x9b4   :  { %1178 = vst.msk [vmem:[#allocation9 + $0x30] sm:$0xff] %vm343_vm6, %v1168_v17 }
 0x9b6   :  { %v3061_v21 = vpop.f32.mrb[6].mxu1 }
 0x9b7   :  { %1273 = vst.msk [vmem:[#allocation9 + $0xb8] sm:$0xff] %vm343_vm6, %v3061_v21  ;;  %v1262_v22 = vpop.f32.mrb[7].mxu1 }
 0x9b8   :  { %1272 = vst.msk [vmem:[#allocation9 + $0xb0] sm:$0xff] %vm343_vm6, %v1262_v22 }
 0xa01   :  { %v1313_v58 = vpop.xlane.xlu0 %1312 }
 0xa02   :  { %vm1314_vm15 = vcmp.eq.f32.partialorder %v1311_v25, %v1313_v58  ;;  %v1319_v16 = vcvt.f32.s32 %v1313_v58 }
 0xa03   :  { %v1315_v62 = vsel %vm1314_vm15, %v1310_v54, inf }
 0xa04   :  { %1316 = vmin.xlane.f32.xlu0 %v1315_v62  ;;  %v1320_v49 = vshll.u32 %v1319_v16, 16 }
 0xa05   :  { %v1341_v0 = vpop.xlane.xlu1 %1340 }
 0xa06   :  { %vm1342_vm0 = vcmp.eq.f32.partialorder %v1339_v8, %v1341_v0  ;;  %v1347_v32 = vcvt.f32.s32 %v1341_v0 }
 0xa07   :  { %v1343_v4 = vsel %vm1342_vm0, %v1338_v9, inf }
 0xa08   :  { %1344 = vmin.xlane.f32.xlu1 %v1343_v4  ;;  %v1348_v19 = vshll.u32 %v1347_v32, 16 }
 0xa0b   :  { %v1303_v3 = vpop.xlane.xlu0 %1302 }
 0xa0c   :  { %v1304_v14 = vcvt.f32.s32 %v1303_v3 }
 0xa0e   :  { %v1307_v2 = vadd.s32 %v1306_v5, %v1304_v14 }
 0xa10   :  { %vm1350_vm1 = vcmp.eq.s32.totalorder %v4079_v1, %v1307_v2 }
 0xa11   :  { %3094 = vmatprep.mubr.msk.f32.mxu0 %vm1350_vm1, %v4029_v51  ;;  %v4595_v31 = vsel %vm1350_vm1, inf, %v4527_v7 }
 0xa12   :  { %1554 = vmin.xlane.f32.xlu0 %v4595_v31 }
 0xa18   :  { %v1331_v27 = vpop.xlane.xlu1 %1330 }
 0xa19   :  { %v1332_v37 = vcvt.f32.s32 %v1331_v27 }
 0xa1b   :  { %v1335_v43 = vadd.s32 %v1334_v53, %v1332_v37 }
 0xa1d   :  { %vm1352_vm2 = vcmp.eq.s32.totalorder %v4079_v1, %v1335_v43 }
 0xa1e   :  { %3129 = vmatprep.mubr.msk.f32.mxu1 %vm1352_vm2, %v4029_v51  ;;  %v4602_v56 = vsel %vm1352_vm2, inf, %v4534_v18 }
 0xa1f   :  { %1558 = vmin.xlane.f32.xlu1 %v4602_v56 }
 0xa91   :  { %v1317_v61 = vpop.xlane.xlu0 %1316 }
 0xa92   :  { %v1318_v52 = vcvt.f32.s32 %v1317_v61 }
 0xa94   :  { %v1321_v46 = vadd.s32 %v1320_v49, %v1318_v52 }
 0xa95   :  { %v1345_v40 = vpop.xlane.xlu1 %1344 }
 0xa96   :  { %v1346_v25 = vcvt.f32.s32 %v1345_v40  ;;  %vm1351_vm3 = vcmp.eq.s32.totalorder %v4079_v1, %v1321_v46 }
 0xa97   :  { %3095 = vmatmul.mubr.msk.f32.vlgmr.msra.gmra.mrb[8].mxu0 %vm1351_vm3, %v4029_v51  ;;  %v4607_v7 = vsel %vm1351_vm3, inf, %v4539_v6 }
 0xa98   :  { %v1349_v8 = vadd.s32 %v1348_v19, %v1346_v25  ;;  %1556 = vmin.xlane.f32.xlu0 %v4607_v7  ;;  %3665 = vmatpush3.bf16.msra.mxu0 %v4446_v63 }
 0xa99   :  { %3667 = vmatprep.subr.bf16.mxu0 %v4448_v24 }
 0xa9a   :  { %vm1353_vm4 = vcmp.eq.s32.totalorder %v4079_v1, %v1349_v8 }
 0xa9b   :  { %3130 = vmatmul.mubr.msk.f32.vlgmr.msra.gmra.mrb[8].mxu1 %vm1353_vm4, %v4029_v51  ;;  %v4615_v18 = vsel %vm1353_vm4, inf, %v4547_v15 }
 0xa9c   :  { %1560 = vmin.xlane.f32.xlu1 %v4615_v18  ;;  %3697 = vmatpush3.bf16.msra.mxu1 %v4450_v26 }
 0xa9d   :  { %3669 = vmatpush3.bf16.msra.mxu0 %v4448_v24  ;;  %3699 = vmatprep.subr.bf16.mxu1 %v4455_v35 }
 0xa9e   :  { %3671 = vmatprep.subr.bf16.mxu0 %v4459_v39 }
 0xa9f   :  { %v1555_v63 = vpop.xlane.xlu0 %1554 }
 0xaa0   :  { %3701 = vmatpush3.bf16.msra.mxu1 %v4455_v35  ;;  %vm1562_vm5 = vcmp.le.f32.partialorder %v4595_v31, %v1555_v63 }
 0xaa1   :  { %3673 = vmatpush3.bf16.msra.mxu0 %v4459_v39  ;;  %3703 = vmatprep.subr.bf16.mxu1 %v4462_v44  ;;  %v1566_v24 = vsel %vm1562_vm5, %v4079_v1, 128 }
 0xaa2   :  { %3675 = vmatprep.subr.bf16.mxu0 %v4467_v48  ;;  %v1571_v26 = vshra.s32 %v1566_v24, 16  ;;  %v1570_v21 = vand.u32 65535, %v1566_v24 }
 0xaa4   :  { %3705 = vmatpush3.bf16.msra.mxu1 %v4462_v44  ;;  %v1573_v44 = vcvt.s32.f32 %v1571_v26  ;;  %v1572_v22 = vcvt.s32.f32 %v1570_v21  ;;  %v2009_v21 = vld [vmem:[#allocation6 + $0x88] sm:$0xff] }
 0xaa5   :  { %3677 = vmatpush3.bf16.msra.mxu0 %v4467_v48  ;;  %3707 = vmatprep.subr.bf16.mxu1 %v4470_v57 }
 0xaa6   :  { %3679 = vmatprep.subr.bf16.mxu0 %v4475_v60  ;;  %1574 = vmin.xlane.f32.xlu0 %v1573_v44 }
 0xaa8   :  { %3709 = vmatpush3.bf16.msra.mxu1 %v4470_v57 }
 0xaa9   :  { %3681 = vmatpush3.bf16.msra.mxu0 %v4475_v60  ;;  %3711 = vmatprep.subr.bf16.mxu1 %v4478_v10 }
 0xaaa   :  { %3683 = vmatprep.subr.bf16.mxu0 %v4483_v11 }
 0xaac   :  { %3713 = vmatpush3.bf16.msra.mxu1 %v4478_v10  ;;  %v1559_v35 = vpop.xlane.xlu1 %1558 }
 0xaad   :  { %3685 = vmatpush3.bf16.msra.mxu0 %v4483_v11  ;;  %3715 = vmatprep.subr.bf16.mxu1 %v4504_v20  ;;  %vm1564_vm7 = vcmp.le.f32.partialorder %v4602_v56, %v1559_v35 }
 0xaae   :  { %3687 = vmatprep.subr.bf16.mxu0 %v4502_v29  ;;  %v1568_v48 = vsel %vm1564_vm7, %v4079_v1, 128 }
 0xaaf   :  { %v1599_v57 = vshra.s32 %v1568_v48, 16  ;;  %v1598_v30 = vand.u32 65535, %v1568_v48 }
 0xab0   :  { %3717 = vmatpush3.bf16.msra.mxu1 %v4504_v20 }
 0xab1   :  { %3689 = vmatpush3.bf16.msra.mxu0 %v4502_v29  ;;  %3719 = vmatprep.subr.bf16.mxu1 %v4512_v28  ;;  %v1601_v29 = vcvt.s32.f32 %v1599_v57  ;;  %v1600_v41 = vcvt.s32.f32 %v1598_v30 }
 0xab2   :  { %3691 = vmatprep.subr.bf16.mxu0 %v4510_v23 }
 0xab3   :  { %1602 = vmin.xlane.f32.xlu1 %v1601_v29 }
 0xab4   :  { %3721 = vmatpush3.bf16.msra.mxu1 %v4512_v28 }
 0xab5   :  { %3693 = vmatpush3.bf16.msra.mxu0 %v4510_v23  ;;  %3723 = vmatprep.subr.bf16.mxu1 %v4518_v34 }
 0xab8   :  { %3725 = vmatpush3.bf16.msra.mxu1 %v4518_v34 }
 0xb25   :  { %v1557_v39 = vpop.xlane.xlu0 %1556 }
 0xb26   :  { %vm1563_vm8 = vcmp.le.f32.partialorder %v4607_v7, %v1557_v39 }
 0xb27   :  { %v1567_v60 = vsel %vm1563_vm8, %v4079_v1, 128 }
 0xb28   :  { %v1585_v10 = vshra.s32 %v1567_v60, 16  ;;  %v1584_v36 = vand.u32 65535, %v1567_v60 }
 0xb29   :  { %v1561_v11 = vpop.xlane.xlu1 %1560 }
 0xb2a   :  { %vm1565_vm9 = vcmp.le.f32.partialorder %v4615_v18, %v1561_v11  ;;  %v1587_v23 = vcvt.s32.f32 %v1585_v10  ;;  %v1586_v47 = vcvt.s32.f32 %v1584_v36  ;;  %v1919_v36 = vld [vmem:[#allocation6 + $0x28] sm:$0xff] }
 0xb2b   :  { %v1569_v20 = vsel %vm1565_vm9, %v4079_v1, 128 }
 0xb2c   :  { %v1613_v28 = vshra.s32 %v1569_v20, 16  ;;  %1588 = vmin.xlane.f32.xlu0 %v1587_v23  ;;  %v1612_v42 = vand.u32 65535, %v1569_v20 }
 0xb2e   :  { %v1615_v34 = vcvt.s32.f32 %v1613_v28  ;;  %v1614_v59 = vcvt.s32.f32 %v1612_v42  ;;  %v1914_v28 = vld [vmem:[#allocation6] sm:$0xff] }
 0xb30   :  { %1616 = vmin.xlane.f32.xlu1 %v1615_v34 }
 0xb33   :  { %v1575_v33 = vpop.xlane.xlu0 %1574 }
 0xb34   :  { %vm1576_vm10 = vcmp.eq.f32.partialorder %v1573_v44, %v1575_v33  ;;  %v1581_v0 = vcvt.f32.s32 %v1575_v33  ;;  %v1918_v33 = vld [vmem:[#allocation6 + $0x20] sm:$0xff] }
 0xb35   :  { %v1577_v38 = vsel %vm1576_vm10, %v1572_v22, inf }
 0xb36   :  { %1578 = vmin.xlane.f32.xlu0 %v1577_v38  ;;  %v1582_v12 = vshll.u32 %v1581_v0, 16  ;;  %v2010_v38 = vld [vmem:[#allocation6 + $0x90] sm:$0xff] }
 0xb40   :  { %v1603_v45 = vpop.xlane.xlu1 %1602 }
 0xb41   :  { %vm1604_vm11 = vcmp.eq.f32.partialorder %v1601_v29, %v1603_v45  ;;  %v1609_v3 = vcvt.f32.s32 %v1603_v45  ;;  %v2012_v45 = vld [vmem:[#allocation6 + $0xa0] sm:$0xff] }
 0xb42   :  { %v1605_v54 = vsel %vm1604_vm11, %v1600_v41, inf  ;;  %v2011_v41 = vld [vmem:[#allocation6 + $0x98] sm:$0xff] }
 0xb43   :  { %1606 = vmin.xlane.f32.xlu1 %v1605_v54  ;;  %v1610_v2 = vshll.u32 %v1609_v3, 16  ;;  %v4723_v42 = vpack.c.bf16 %v2011_v41, %v2010_v38  ;;  %v1920_v54 = vld [vmem:[#allocation6 + $0x30] sm:$0xff]  ;;  %v2023_v38 = vld [vmem:[#allocation6 + $0xf8] sm:$0xff] }
 0xb6a   :  { %v3096_v6 = vpop.f32.mrb[8].mxu0 }
 0xb6b   :  { %1455 = vst.msk [vmem:[#allocation9 + $0x48] sm:$0xff] %vm343_vm6, %v3096_v6  ;;  %v1444_v15 = vpop.f32.mrb[9].mxu0  ;;  %v1916_v6 = vld [vmem:[#allocation6 + $0x10] sm:$0xff] }
 0xb6c   :  { %1454 = vst.msk [vmem:[#allocation9 + $0x40] sm:$0xff] %vm343_vm6, %v1444_v15 }
 0xb6e   :  { %v3131_v55 = vpop.f32.mrb[8].mxu1 }
 0xb6f   :  { %1549 = vst.msk [vmem:[#allocation9 + $0xc8] sm:$0xff] %vm343_vm6, %v3131_v55  ;;  %v1538_v17 = vpop.f32.mrb[9].mxu1  ;;  %v1917_v55 = vld [vmem:[#allocation6 + $0x18] sm:$0xff] }
 0xb70   :  { %1548 = vst.msk [vmem:[#allocation9 + $0xc0] sm:$0xff] %vm343_vm6, %v1538_v17  ;;  %v2008_v17 = vld [vmem:[#allocation6 + $0x80] sm:$0xff]  ;;  %v4716_v22 = vpack.c.bf16 %v1917_v55, %v1916_v6  ;;  %v2019_v6 = vld [vmem:[#allocation6 + $0xd8] sm:$0xff] }
 0xb71   :  { %v4718_v30 = vpack.c.bf16 %v2009_v21, %v2008_v17  ;;  %v2020_v17 = vld [vmem:[#allocation6 + $0xe0] sm:$0xff]  ;;  %v2021_v21 = vld [vmem:[#allocation6 + $0xe8] sm:$0xff] }
 0xb73   :  { %3759 = vmatprep.subr.bf16.mxu1 %v4718_v30 }
 0xbb9   :  { %v1589_v50 = vpop.xlane.xlu0 %1588 }
 0xbba   :  { %vm1590_vm12 = vcmp.eq.f32.partialorder %v1587_v23, %v1589_v50  ;;  %v1595_v13 = vcvt.f32.s32 %v1589_v50  ;;  %v4727_v50 = vpack.c.bf16 %v1919_v36, %v1918_v33  ;;  %v4780_v33 = vpack.c.bf16 %v2021_v21, %v2020_v17  ;;  %v2022_v36 = vld [vmem:[#allocation6 + $0xf0] sm:$0xff] }
 0xbbb   :  { %v1591_v58 = vsel %vm1590_vm12, %v1586_v47, inf  ;;  %v2013_v47 = vld [vmem:[#allocation6 + $0xa8] sm:$0xff]  ;;  %v4786_v41 = vpack.c.bf16 %v2023_v38, %v2022_v36 }
 0xbbc   :  { %1592 = vmin.xlane.f32.xlu0 %v1591_v58  ;;  %v1596_v37 = vshll.u32 %v1595_v13, 16  ;;  %v1921_v58 = vld [vmem:[#allocation6 + $0x38] sm:$0xff]  ;;  %v2017_v13 = vld [vmem:[#allocation6 + $0xc8] sm:$0xff] }
 0xbbd   :  { %v1617_v62 = vpop.xlane.xlu1 %1616  ;;  %v4735_v0 = vpack.c.bf16 %v1921_v58, %v1920_v54 }
 0xbbe   :  { %vm1618_vm13 = vcmp.eq.f32.partialorder %v1615_v34, %v1617_v62  ;;  %v1623_v27 = vcvt.f32.s32 %v1617_v62  ;;  %v1915_v34 = vld [vmem:[#allocation6 + $0x8] sm:$0xff]  ;;  %v2014_v62 = vld [vmem:[#allocation6 + $0xb0] sm:$0xff] }
 0xbbf   :  { %v1619_v9 = vsel %vm1618_vm13, %v1614_v59, inf  ;;  %v4714_v15 = vpack.c.bf16 %v1915_v34, %v1914_v28  ;;  %v4730_v59 = vpack.c.bf16 %v2013_v47, %v2012_v45  ;;  %v1927_v28 = vld [vmem:[#allocation6 + $0x68] sm:$0xff] }
 0xbc0   :  { %1620 = vmin.xlane.f32.xlu1 %v1619_v9  ;;  %v1624_v40 = vshll.u32 %v1623_v27, 16  ;;  %v2015_v9 = vld [vmem:[#allocation6 + $0xb8] sm:$0xff] }
 0xbc1   :  { %3727 = vmatprep.subr.bf16.mxu0 %v4714_v15  ;;  %v4738_v3 = vpack.c.bf16 %v2015_v9, %v2014_v62 }
 0xbc3   :  { %v1579_v4 = vpop.xlane.xlu0 %1578 }
 0xbc4   :  { %v1580_v5 = vcvt.f32.s32 %v1579_v4  ;;  %v1922_v4 = vld [vmem:[#allocation6 + $0x40] sm:$0xff] }
 0xbc6   :  { %v1583_v14 = vadd.s32 %v1582_v12, %v1580_v5  ;;  %v1923_v12 = vld [vmem:[#allocation6 + $0x48] sm:$0xff]  ;;  %v2016_v5 = vld [vmem:[#allocation6 + $0xc0] sm:$0xff] }
 0xbc7   :  { %v4746_v27 = vpack.c.bf16 %v2017_v13, %v2016_v5 }
 0xbc8   :  { %vm1626_vm14 = vcmp.eq.s32.totalorder %v4079_v1, %v1583_v14  ;;  %v4743_v14 = vpack.c.bf16 %v1923_v12, %v1922_v4 }
 0xbc9   :  { %3164 = vmatprep.mubr.msk.f32.mxu0 %vm1626_vm14, %v4029_v51  ;;  %v4661_v49 = vsel %vm1626_vm14, inf, %v4595_v31 }
 0xbca   :  { %1830 = vmin.xlane.f32.xlu0 %v4661_v49 }
 0xbd0   :  { %v1607_v16 = vpop.xlane.xlu1 %1606 }
 0xbd1   :  { %v1608_v53 = vcvt.f32.s32 %v1607_v16  ;;  %v1924_v16 = vld [vmem:[#allocation6 + $0x50] sm:$0xff] }
 0xbd3   :  { %v1611_v52 = vadd.s32 %v1610_v2, %v1608_v53  ;;  %v1925_v2 = vld [vmem:[#allocation6 + $0x58] sm:$0xff] }
 0xbd4   :  { %v4751_v53 = vpack.c.bf16 %v1925_v2, %v1924_v16 }
 0xbd5   :  { %vm1628_vm15 = vcmp.eq.s32.totalorder %v4079_v1, %v1611_v52 }
 0xbd6   :  { %3199 = vmatprep.mubr.msk.f32.mxu1 %vm1628_vm15, %v4029_v51  ;;  %v4668_v25 = vsel %vm1628_vm15, inf, %v4602_v56 }
 0xbd7   :  { %1834 = vmin.xlane.f32.xlu1 %v4668_v25 }
 0xc49   :  { %v1593_v32 = vpop.xlane.xlu0 %1592 }
 0xc4a   :  { %v1594_v61 = vcvt.f32.s32 %v1593_v32 }
 0xc4c   :  { %v1597_v43 = vadd.s32 %v1596_v37, %v1594_v61 }
 0xc4d   :  { %v1621_v46 = vpop.xlane.xlu1 %1620 }
 0xc4e   :  { %v1622_v19 = vcvt.f32.s32 %v1621_v46  ;;  %vm1627_vm0 = vcmp.eq.s32.totalorder %v4079_v1, %v1597_v43 }
 0xc4f   :  { %3165 = vmatmul.mubr.msk.f32.vlgmr.msra.gmra.mrb[10].mxu0 %vm1627_vm0, %v4029_v51  ;;  %v4673_v31 = vsel %vm1627_vm0, inf, %v4607_v7 }
 0xc50   :  { %v1625_v8 = vadd.s32 %v1624_v40, %v1622_v19  ;;  %1832 = vmin.xlane.f32.xlu0 %v4673_v31  ;;  %3729 = vmatpush3.bf16.msra.mxu0 %v4714_v15 }
 0xc51   :  { %3731 = vmatprep.subr.bf16.mxu0 %v4716_v22 }
 0xc52   :  { %vm1629_vm1 = vcmp.eq.s32.totalorder %v4079_v1, %v1625_v8 }
 0xc53   :  { %3200 = vmatmul.mubr.msk.f32.vlgmr.msra.gmra.mrb[10].mxu1 %vm1629_vm1, %v4029_v51  ;;  %v4679_v63 = vsel %vm1629_vm1, inf, %v4615_v18 }
 0xc54   :  { %1836 = vmin.xlane.f32.xlu1 %v4679_v63  ;;  %3761 = vmatpush3.bf16.msra.mxu1 %v4718_v30 }
 0xc55   :  { %3763 = vmatprep.subr.bf16.mxu1 %v4723_v42  ;;  %3733 = vmatpush3.bf16.msra.mxu0 %v4716_v22 }
 0xc56   :  { %3735 = vmatprep.subr.bf16.mxu0 %v4727_v50 }
 0xc57   :  { %v1831_v56 = vpop.xlane.xlu0 %1830 }
 0xc58   :  { %vm1838_vm2 = vcmp.le.f32.partialorder %v4661_v49, %v1831_v56  ;;  %3765 = vmatpush3.bf16.msra.mxu1 %v4723_v42 }
 0xc59   :  { %v4684_v24 = vsel %vm1838_vm2, %v4079_v1, 128  ;;  %3767 = vmatprep.subr.bf16.mxu1 %v4730_v59  ;;  %3737 = vmatpush3.bf16.msra.mxu0 %v4727_v50 }
 0xc5a   :  { %v1847_v7 = vshra.s32 %v4684_v24, 16  ;;  %3739 = vmatprep.subr.bf16.mxu0 %v4735_v0  ;;  %v1846_v43 = vand.u32 65535, %v4684_v24 }
 0xc5c   :  { %v4688_v39 = vcvt.s32.f32 %v1847_v7  ;;  %3769 = vmatpush3.bf16.msra.mxu1 %v4730_v59  ;;  %v1848_v46 = vcvt.s32.f32 %v1846_v43 }
 0xc5d   :  { %3771 = vmatprep.subr.bf16.mxu1 %v4738_v3  ;;  %3741 = vmatpush3.bf16.msra.mxu0 %v4735_v0 }
 0xc5e   :  { %1850 = vmin.xlane.f32.xlu0 %v4688_v39  ;;  %3743 = vmatprep.subr.bf16.mxu0 %v4743_v14 }
 0xc60   :  { %3773 = vmatpush3.bf16.msra.mxu1 %v4738_v3 }
 0xc61   :  { %3775 = vmatprep.subr.bf16.mxu1 %v4746_v27  ;;  %3745 = vmatpush3.bf16.msra.mxu0 %v4743_v14 }
 0xc62   :  { %3747 = vmatprep.subr.bf16.mxu0 %v4751_v53 }
 0xc64   :  { %v1835_v26 = vpop.xlane.xlu1 %1834  ;;  %3777 = vmatpush3.bf16.msra.mxu1 %v4746_v27 }
 0xc65   :  { %vm1840_vm3 = vcmp.le.f32.partialorder %v4668_v25, %v1835_v26  ;;  %3749 = vmatpush3.bf16.msra.mxu0 %v4751_v53 }
 0xc66   :  { %v4691_v44 = vsel %vm1840_vm3, %v4079_v1, 128 }
 0xc67   :  { %v1875_v18 = vshra.s32 %v4691_v44, 16  ;;  %v1874_v40 = vand.u32 65535, %v4691_v44 }
 0xc69   :  { %v4701_v10 = vcvt.s32.f32 %v1875_v18  ;;  %v1876_v7 = vcvt.s32.f32 %v1874_v40 }
 0xc6b   :  { %1878 = vmin.xlane.f32.xlu1 %v4701_v10 }
 0xcdd   :  { %v1833_v35 = vpop.xlane.xlu0 %1832 }
 0xcde   :  { %vm1839_vm4 = vcmp.le.f32.partialorder %v4673_v31, %v1833_v35 }
 0xcdf   :  { %v4696_v48 = vsel %vm1839_vm4, %v4079_v1, 128 }
 0xce0   :  { %v1861_v57 = vshra.s32 %v4696_v48, 16  ;;  %v1860_v8 = vand.u32 65535, %v4696_v48 }
 0xce1   :  { %v1837_v60 = vpop.xlane.xlu1 %1836 }
 0xce2   :  { %vm1841_vm5 = vcmp.le.f32.partialorder %v4679_v63, %v1837_v60  ;;  %v4706_v29 = vcvt.s32.f32 %v1861_v57  ;;  %v1862_v18 = vcvt.s32.f32 %v1860_v8 }
 0xce3   :  { %v4704_v11 = vsel %vm1841_vm5, %v4079_v1, 128 }
 0xce4   :  { %v1889_v20 = vshra.s32 %v4704_v11, 16  ;;  %1864 = vmin.xlane.f32.xlu0 %v4706_v29  ;;  %v1888_v26 = vand.u32 65535, %v4704_v11  ;;  %v2018_v11 = vld [vmem:[#allocation6 + $0xd0] sm:$0xff] }
 0xce5   :  { %v4772_v55 = vpack.c.bf16 %v2019_v6, %v2018_v11 }
 0xce6   :  { %v4711_v23 = vcvt.s32.f32 %v1889_v20  ;;  %v1890_v44 = vcvt.s32.f32 %v1888_v26  ;;  %v1926_v20 = vld [vmem:[#allocation6 + $0x60] sm:$0xff] }
 0xce7   :  { %v4770_v34 = vpack.c.bf16 %v1927_v28, %v1926_v20  ;;  %3779 = vmatprep.subr.bf16.mxu1 %v4772_v55 }
 0xce8   :  { %1892 = vmin.xlane.f32.xlu1 %v4711_v23  ;;  %3781 = vmatpush3.bf16.msra.mxu1 %v4772_v55 }
 0xce9   :  { %3751 = vmatprep.subr.bf16.mxu0 %v4770_v34  ;;  %3783 = vmatprep.subr.bf16.mxu1 %v4780_v33 }
 0xcea   :  { %3753 = vmatpush3.bf16.msra.mxu0 %v4770_v34 }
 0xceb   :  { %v1851_v19 = vpop.xlane.xlu0 %1850 }
 0xcec   :  { %vm1852_vm7 = vcmp.eq.f32.partialorder %v4688_v39, %v1851_v19  ;;  %3785 = vmatpush3.bf16.msra.mxu1 %v4780_v33  ;;  %v1857_v45 = vcvt.f32.s32 %v1851_v19 }
 0xced   :  { %v1853_v56 = vsel %vm1852_vm7, %v1848_v46, inf  ;;  %3787 = vmatprep.subr.bf16.mxu1 %v4786_v41 }
 0xcee   :  { %1854 = vmin.xlane.f32.xlu0 %v1853_v56  ;;  %v1858_v54 = vshll.u32 %v1857_v45, 16 }
 0xcf0   :  { %3789 = vmatpush3.bf16.msra.mxu1 %v4786_v41 }
 0xcf1   :  { %3823 = vmatprep.subr.bf16.mxu1 %v4718_v30 }
 0xcf8   :  { %v1879_v35 = vpop.xlane.xlu1 %1878 }
 0xcf9   :  { %vm1880_vm8 = vcmp.eq.f32.partialorder %v4701_v10, %v1879_v35  ;;  %v1928_v10 = vld [vmem:[#allocation6 + $0x70] sm:$0xff]  ;;  %v1885_v58 = vcvt.f32.s32 %v1879_v35 }
 0xcfa   :  { %v1881_v60 = vsel %vm1880_vm8, %v1876_v7, inf }
 0xcfb   :  { %1882 = vmin.xlane.f32.xlu1 %v1881_v60  ;;  %v1886_v5 = vshll.u32 %v1885_v58, 16 }
 0xd22   :  { %v3166_v32 = vpop.f32.mrb[10].mxu0 }
 0xd23   :  { %1731 = vst.msk [vmem:[#allocation9 + $0x58] sm:$0xff] %vm343_vm6, %v3166_v32  ;;  %v1720_v37 = vpop.f32.mrb[11].mxu0 }
 0xd24   :  { %1730 = vst.msk [vmem:[#allocation9 + $0x50] sm:$0xff] %vm343_vm6, %v1720_v37 }
 0xd26   :  { %v3201_v61 = vpop.f32.mrb[10].mxu1 }
 0xd27   :  { %1825 = vst.msk [vmem:[#allocation9 + $0xd8] sm:$0xff] %vm343_vm6, %v3201_v61  ;;  %v1814_v52 = vpop.f32.mrb[11].mxu1 }
 0xd28   :  { %1824 = vst.msk [vmem:[#allocation9 + $0xd0] sm:$0xff] %vm343_vm6, %v1814_v52 }
 0xd71   :  { %v1865_v57 = vpop.xlane.xlu0 %1864 }
 0xd72   :  { %vm1866_vm9 = vcmp.eq.f32.partialorder %v4706_v29, %v1865_v57  ;;  %v1929_v29 = vld [vmem:[#allocation6 + $0x78] sm:$0xff]  ;;  %v1871_v9 = vcvt.f32.s32 %v1865_v57 }
 0xd73   :  { %v1867_v24 = vsel %vm1866_vm9, %v1862_v18, inf }
 0xd74   :  { %1868 = vmin.xlane.f32.xlu0 %v1867_v24  ;;  %v1872_v32 = vshll.u32 %v1871_v9, 16 }
 0xd75   :  { %v1893_v48 = vpop.xlane.xlu1 %1892 }
 0xd76   :  { %vm1894_vm10 = vcmp.eq.f32.partialorder %v4711_v23, %v1893_v48  ;;  %v4778_v23 = vpack.c.bf16 %v1929_v29, %v1928_v10  ;;  %v1899_v13 = vcvt.f32.s32 %v1893_v48 }
 0xd77   :  { %v1895_v39 = vsel %vm1894_vm10, %v1890_v44, inf }
 0xd78   :  { %1896 = vmin.xlane.f32.xlu1 %v1895_v39  ;;  %3755 = vmatprep.subr.bf16.mxu0 %v4778_v23  ;;  %v1900_v40 = vshll.u32 %v1899_v13, 16 }
 0xd79   :  { %3757 = vmatpush3.bf16.msra.mxu0 %v4778_v23 }
 0xd7a   :  { %3791 = vmatprep.subr.bf16.mxu0 %v4714_v15 }
 0xd7b   :  { %v1855_v47 = vpop.xlane.xlu0 %1854 }
 0xd7c   :  { %v1856_v62 = vcvt.f32.s32 %v1855_v47 }
 0xd7e   :  { %v1859_v4 = vadd.s32 %v1858_v54, %v1856_v62 }
 0xd80   :  { %vm1902_vm11 = vcmp.eq.s32.totalorder %v4079_v1, %v1859_v4 }
 0xd81   :  { %3234 = vmatprep.mubr.msk.f32.mxu0 %vm1902_vm11, %v4029_v51  ;;  %v2102_v61 = vsel %vm1902_vm11, inf, %v4661_v49 }
 0xd82   :  { %2106 = vmin.xlane.f32.xlu0 %v2102_v61 }
 0xd88   :  { %v1883_v12 = vpop.xlane.xlu1 %1882 }
 0xd89   :  { %v1884_v16 = vcvt.f32.s32 %v1883_v12 }
 0xd8b   :  { %v1887_v52 = vadd.s32 %v1886_v5, %v1884_v16 }
 0xd8d   :  { %vm1904_vm12 = vcmp.eq.s32.totalorder %v4079_v1, %v1887_v52 }
 0xd8e   :  { %3269 = vmatprep.mubr.msk.f32.mxu1 %vm1904_vm12, %v4029_v51  ;;  %v2104_v8 = vsel %vm1904_vm12, inf, %v4668_v25 }
 0xd8f   :  { %2110 = vmin.xlane.f32.xlu1 %v2104_v8 }
 0xe01   :  { %v1869_v2 = vpop.xlane.xlu0 %1868 }
 0xe02   :  { %v1870_v37 = vcvt.f32.s32 %v1869_v2 }
 0xe04   :  { %v1873_v43 = vadd.s32 %v1872_v32, %v1870_v37 }
 0xe05   :  { %v1897_v46 = vpop.xlane.xlu1 %1896 }
 0xe06   :  { %v1898_v19 = vcvt.f32.s32 %v1897_v46  ;;  %vm1903_vm13 = vcmp.eq.s32.totalorder %v4079_v1, %v1873_v43 }
 0xe07   :  { %3235 = vmatmul.mubr.msk.f32.vlgmr.msra.gmra.mrb[12].mxu0 %vm1903_vm13, %v4029_v51  ;;  %v2103_v49 = vsel %vm1903_vm13, inf, %v4673_v31 }
 0xe08   :  { %v1901_v56 = vadd.s32 %v1900_v40, %v1898_v19  ;;  %2108 = vmin.xlane.f32.xlu0 %v2103_v49  ;;  %3793 = vmatpush3.bf16.msra.mxu0 %v4714_v15 }
 0xe09   :  { %3795 = vmatprep.subr.bf16.mxu0 %v4716_v22 }
 0xe0a   :  { %vm1905_vm14 = vcmp.eq.s32.totalorder %v4079_v1, %v1901_v56 }
 0xe0b   :  { %3270 = vmatmul.mubr.msk.f32.vlgmr.msra.gmra.mrb[12].mxu1 %vm1905_vm14, %v4029_v51  ;;  %v2105_v7 = vsel %vm1905_vm14, inf, %v4679_v63 }
 0xe0c   :  { %2112 = vmin.xlane.f32.xlu1 %v2105_v7  ;;  %3825 = vmatpush3.bf16.msra.mxu1 %v4718_v30 }
 0xe0d   :  { %3797 = vmatpush3.bf16.msra.mxu0 %v4716_v22  ;;  %3827 = vmatprep.subr.bf16.mxu1 %v4723_v42 }
 0xe0e   :  { %3799 = vmatprep.subr.bf16.mxu0 %v4727_v50 }
 0xe0f   :  { %v2107_v25 = vpop.xlane.xlu0 %2106 }
 0xe10   :  { %3829 = vmatpush3.bf16.msra.mxu1 %v4723_v42  ;;  %vm2114_vm15 = vcmp.le.f32.partialorder %v2102_v61, %v2107_v25 }
 0xe11   :  { %3801 = vmatpush3.bf16.msra.mxu0 %v4727_v50  ;;  %3831 = vmatprep.subr.bf16.mxu1 %v4730_v59  ;;  %v2118_v31 = vsel %vm2114_vm15, %v4079_v1, 128 }
 0xe12   :  { %3803 = vmatprep.subr.bf16.mxu0 %v4735_v0  ;;  %v2123_v63 = vshra.s32 %v2118_v31, 16  ;;  %v2122_v44 = vand.u32 65535, %v2118_v31 }
 0xe14   :  { %3833 = vmatpush3.bf16.msra.mxu1 %v4730_v59  ;;  %v2125_v30 = vcvt.s32.f32 %v2123_v63  ;;  %v2124_v48 = vcvt.s32.f32 %v2122_v44 }
 0xe15   :  { %3805 = vmatpush3.bf16.msra.mxu0 %v4735_v0  ;;  %3835 = vmatprep.subr.bf16.mxu1 %v4738_v3 }
 0xe16   :  { %3807 = vmatprep.subr.bf16.mxu0 %v4743_v14  ;;  %2126 = vmin.xlane.f32.xlu0 %v2125_v30 }
 0xe18   :  { %3837 = vmatpush3.bf16.msra.mxu1 %v4738_v3 }
 0xe19   :  { %3809 = vmatpush3.bf16.msra.mxu0 %v4743_v14  ;;  %3839 = vmatprep.subr.bf16.mxu1 %v4746_v27 }
 0xe1a   :  { %3811 = vmatprep.subr.bf16.mxu0 %v4751_v53 }
 0xe1c   :  { %3841 = vmatpush3.bf16.msra.mxu1 %v4746_v27  ;;  %v2111_v15 = vpop.xlane.xlu1 %2110 }
 0xe1d   :  { %3813 = vmatpush3.bf16.msra.mxu0 %v4751_v53  ;;  %3843 = vmatprep.subr.bf16.mxu1 %v4772_v55  ;;  %vm2116_vm0 = vcmp.le.f32.partialorder %v2104_v8, %v2111_v15 }
 0xe1e   :  { %3815 = vmatprep.subr.bf16.mxu0 %v4770_v34  ;;  %v2120_v42 = vsel %vm2116_vm0, %v4079_v1, 128 }
 0xe1f   :  { %v2151_v50 = vshra.s32 %v2120_v42, 16  ;;  %v2150_v39 = vand.u32 65535, %v2120_v42 }
 0xe20   :  { %3845 = vmatpush3.bf16.msra.mxu1 %v4772_v55 }
 0xe21   :  { %3817 = vmatpush3.bf16.msra.mxu0 %v4770_v34  ;;  %3847 = vmatprep.subr.bf16.mxu1 %v4780_v33  ;;  %v2153_v14 = vcvt.s32.f32 %v2151_v50  ;;  %v2152_v34 = vcvt.s32.f32 %v2150_v39 }
 0xe22   :  { %3819 = vmatprep.subr.bf16.mxu0 %v4778_v23 }
 0xe23   :  { %2154 = vmin.xlane.f32.xlu1 %v2153_v14 }
 0xe24   :  { %3849 = vmatpush3.bf16.msra.mxu1 %v4780_v33 }
 0xe25   :  { %3821 = vmatpush3.bf16.msra.mxu0 %v4778_v23  ;;  %3851 = vmatprep.subr.bf16.mxu1 %v4786_v41 }
 0xe28   :  { %3853 = vmatpush3.bf16.msra.mxu1 %v4786_v41 }
 0xe95   :  { %v2109_v22 = vpop.xlane.xlu0 %2108 }
 0xe96   :  { %vm2115_vm1 = vcmp.le.f32.partialorder %v2103_v49, %v2109_v22 }
 0xe97   :  { %v2119_v59 = vsel %vm2115_vm1, %v4079_v1, 128 }
 0xe98   :  { %v2137_v0 = vshra.s32 %v2119_v59, 16  ;;  %v2136_v28 = vand.u32 65535, %v2119_v59 }
 0xe99   :  { %v2113_v3 = vpop.xlane.xlu1 %2112 }
 0xe9a   :  { %vm2117_vm2 = vcmp.le.f32.partialorder %v2105_v7, %v2113_v3  ;;  %v2139_v53 = vcvt.s32.f32 %v2137_v0  ;;  %v2138_v10 = vcvt.s32.f32 %v2136_v28 }
 0xe9b   :  { %v2121_v27 = vsel %vm2117_vm2, %v4079_v1, 128 }
 0xe9c   :  { %v2165_v26 = vshra.s32 %v2121_v27, 16  ;;  %2140 = vmin.xlane.f32.xlu0 %v2139_v53  ;;  %v2164_v6 = vand.u32 65535, %v2121_v27 }
 0xe9e   :  { %v2167_v35 = vcvt.s32.f32 %v2165_v26  ;;  %v2166_v21 = vcvt.s32.f32 %v2164_v6 }
 0xea0   :  { %2168 = vmin.xlane.f32.xlu1 %v2167_v35 }
 0xea3   :  { %v2127_v20 = vpop.xlane.xlu0 %2126 }
 0xea4   :  { %vm2128_vm3 = vcmp.eq.f32.partialorder %v2125_v30, %v2127_v20  ;;  %v2133_v38 = vcvt.f32.s32 %v2127_v20 }
 0xea5   :  { %v2129_v11 = vsel %vm2128_vm3, %v2124_v48, inf }
 0xea6   :  { %2130 = vmin.xlane.f32.xlu0 %v2129_v11  ;;  %v2134_v45 = vshll.u32 %v2133_v38, 16 }
 0xeb0   :  { %v2155_v55 = vpop.xlane.xlu1 %2154 }
 0xeb1   :  { %vm2156_vm4 = vcmp.eq.f32.partialorder %v2153_v14, %v2155_v55  ;;  %v2161_v47 = vcvt.f32.s32 %v2155_v55 }
 0xeb2   :  { %v2157_v17 = vsel %vm2156_vm4, %v2152_v34, inf }
 0xeb3   :  { %2158 = vmin.xlane.f32.xlu1 %v2157_v17  ;;  %v2162_v4 = vshll.u32 %v2161_v47, 16 }
 0xeda   :  { %v3236_v18 = vpop.f32.mrb[12].mxu0 }
 0xedb   :  { %2007 = vst.msk [vmem:[#allocation9 + $0x68] sm:$0xff] %vm343_vm6, %v3236_v18  ;;  %v1996_v57 = vpop.f32.mrb[13].mxu0 }
 0xedc   :  { %2006 = vst.msk [vmem:[#allocation9 + $0x60] sm:$0xff] %vm343_vm6, %v1996_v57 }
 0xede   :  { %v3271_v60 = vpop.f32.mrb[12].mxu1 }
 0xedf   :  { %2101 = vst.msk [vmem:[#allocation9 + $0xe8] sm:$0xff] %vm343_vm6, %v3271_v60  ;;  %v2090_v24 = vpop.f32.mrb[13].mxu1 }
 0xee0   :  { %2100 = vst.msk [vmem:[#allocation9 + $0xe0] sm:$0xff] %vm343_vm6, %v2090_v24 }
 0xf29   :  { %v2141_v29 = vpop.xlane.xlu0 %2140 }
 0xf2a   :  { %vm2142_vm5 = vcmp.eq.f32.partialorder %v2139_v53, %v2141_v29  ;;  %v2147_v58 = vcvt.f32.s32 %v2141_v29 }
 0xf2b   :  { %v2143_v23 = vsel %vm2142_vm5, %v2138_v10, inf }
 0xf2c   :  { %2144 = vmin.xlane.f32.xlu0 %v2143_v23  ;;  %v2148_v16 = vshll.u32 %v2147_v58, 16 }
 0xf2d   :  { %v2169_v33 = vpop.xlane.xlu1 %2168 }
 0xf2e   :  { %vm2170_vm7 = vcmp.eq.f32.partialorder %v2167_v35, %v2169_v33  ;;  %v2175_v12 = vcvt.f32.s32 %v2169_v33 }
 0xf2f   :  { %v2171_v36 = vsel %vm2170_vm7, %v2166_v21, inf }
 0xf30   :  { %2172 = vmin.xlane.f32.xlu1 %v2171_v36  ;;  %v2176_v52 = vshll.u32 %v2175_v12, 16 }
 0xf33   :  { %v2131_v41 = vpop.xlane.xlu0 %2130 }
 0xf34   :  { %v2132_v54 = vcvt.f32.s32 %v2131_v41 }
 0xf36   :  { %v2135_v62 = vadd.s32 %v2134_v45, %v2132_v54 }
 0xf38   :  { %vm2178_vm8 = vcmp.eq.s32.totalorder %v4079_v1, %v2135_v62 }
 0xf39   :  { %3304 = vmatprep.mubr.msk.f32.mxu0 %vm2178_vm8, %v4029_v51 }
 0xf40   :  { %v2159_v9 = vpop.xlane.xlu1 %2158 }
 0xf41   :  { %v2160_v5 = vcvt.f32.s32 %v2159_v9 }
 0xf43   :  { %v2163_v32 = vadd.s32 %v2162_v4, %v2160_v5 }
 0xf45   :  { %vm2180_vm9 = vcmp.eq.s32.totalorder %v4079_v1, %v2163_v32 }
 0xf46   :  { %3339 = vmatprep.mubr.msk.f32.mxu1 %vm2180_vm9, %v4029_v51 }
 0xfb9   :  { %v2145_v13 = vpop.xlane.xlu0 %2144 }
 0xfba   :  { %v2146_v2 = vcvt.f32.s32 %v2145_v13 }
 0xfbc   :  { %v2149_v37 = vadd.s32 %v2148_v16, %v2146_v2 }
 0xfbd   :  { %v2173_v61 = vpop.xlane.xlu1 %2172 }
 0xfbe   :  { %v2174_v43 = vcvt.f32.s32 %v2173_v61  ;;  %vm2179_vm10 = vcmp.eq.s32.totalorder %v4079_v1, %v2149_v37 }
 0xfbf   :  { %3305 = vmatmul.mubr.msk.f32.vlgmr.msra.gmra.mrb[14].mxu0 %vm2179_vm10, %v4029_v51 }
 0xfc0   :  { %v2177_v46 = vadd.s32 %v2176_v52, %v2174_v43 }
 0xfc2   :  { %vm2181_vm11 = vcmp.eq.s32.totalorder %v4079_v1, %v2177_v46 }
 0xfc3   :  { %3340 = vmatmul.mubr.msk.f32.vlgmr.msra.gmra.mrb[14].mxu1 %vm2181_vm11, %v4029_v51 }
 0xfc4   :  { %3950 = shalt.err (!%p3947_p7)
}
 0xfc5   :  { %s3951_s18 = scalar_lea.hbm %s4886_s2, 512 }
 0xfc6   :  { %p3952_p8 = scmp.ne.s32.totalorder %s4886_s2, %s3951_s18  ;;  %p3955_p9 = scmp.lt.u32.totalorder %s3951_s18, %s4886_s2 }
 0xfc8   :  { %p3957_p10 = pnand %p3955_p9, %p3952_p8 }
 0xfca   :  { %3960 = shalt.err (!%p3957_p10)
}
 0xfcb   :  { %2389 = dma.vmem_to_hbm [thread:$0]  %s2384_s14, 512, %s4886_s2, [#allocation5], %s4027_s0, %s4027_s0, %s4028_s9  }
 0xfcc   :  { %s4031_s25 = smov [#allocation9]  }
 0xfcd   :  { %s2395_s26 = sshll.u32 %s4031_s25, 4  ;;  %s2396_s26 = int_to_ptr.vmem [resolvable:$true] %s2395_s26 }
 0xfce   :  { %s3961_s27 = scalar_lea.vmem %s2396_s26, 4096  ;;  %p3966_p12 = scmp.lt.s32.totalorder %s2396_s26, %s2396_s26 }
 0xfcf   :  { %p3962_p11 = scmp.ne.s32.totalorder %s2396_s26, %s3961_s27  ;;  %p3967_p13 = scmp.lt.s32.totalorder %s3961_s27, %s3961_s27 }
 0xfd1   :  { %p3968_p0 = por %p3967_p13, %p3966_p12 }
 0xfd3   :  { %p3969_p1 = pnand %p3968_p0, %p3962_p11 }
0x1092   :  { %v3306_v1 = vpop.f32.mrb[14].mxu0 }
0x1093   :  { %2283 = vst.msk [vmem:[#allocation9 + $0x78] sm:$0xff] %vm343_vm6, %v3306_v1  ;;  %v2272_v51 = vpop.f32.mrb[15].mxu0 }
0x1094   :  { %2282 = vst.msk [vmem:[#allocation9 + $0x70] sm:$0xff] %vm343_vm6, %v2272_v51 }
0x1096   :  { %v3341_v40 = vpop.f32.mrb[14].mxu1 }
0x1097   :  { %2377 = vst.msk [vmem:[#allocation9 + $0xf8] sm:$0xff] %vm343_vm6, %v3341_v40  ;;  %v2366_v19 = vpop.f32.mrb[15].mxu1 }
0x1098   :  { %2376 = vst.msk [vmem:[#allocation9 + $0xf0] sm:$0xff] %vm343_vm6, %v2366_v19 }
0x1099   :  { %3972 = shalt.err (!%p3969_p1)
}
0x109a   :  { %s3973_s29 = scalar_lea.hbm %s4887_s3, 4096 }
0x109b   :  { %p3974_p2 = scmp.ne.s32.totalorder %s4887_s3, %s3973_s29  ;;  %p3977_p3 = scmp.lt.u32.totalorder %s3973_s29, %s4887_s3 }
0x109d   :  { %p3979_p4 = pnand %p3977_p3, %p3974_p2 }
0x109f   :  { %3982 = shalt.err (!%p3979_p4)
}
0x10a0   :  { %2401 = dma.vmem_to_hbm [thread:$0]  %s2396_s26, 4096, %s4887_s3, [#allocation10], %s4027_s0, %s4027_s0, %s4028_s9  }
0x10a1   :  { %4003 = dma.done.wait [#allocation5], 512  }
0x10a2   :  { %4004 = vsyncadd [#allocation5], 4294966784 }
0x10a3   :  { %4005 = dma.done.wait [#allocation10], 4096  }
0x10a4   :  { %4006 = vsyncadd [#allocation10], 4294963200 }
0x10a5   :  { %2408 = vsyncpa [#allocation4], 1 }
0x10a6   :  { %2409 = vsyncpa [#allocation7], 1 }
0x10a7   :  { %2410 = vsyncpa [#allocation5], 1 }
0x10a8   :  { %2411 = vsyncpa [#allocation10], 1 }

</bundles_post_ra>
